<compile_context>
chip_gen: v6e
topology: v6e:2x2x1
jax: 0.10.0
libtpu: 0.0.40
codegen_flags: <defaults>
</compile_context>

<pallas_src>
import jax
import jax.numpy as jnp
from jax.experimental import pallas as pl
from jax.experimental.pallas import tpu as pltpu


# ------------------------------ Fused kernel ---------------------------------
def _make_attention_kernel(*, heads, dim_head, scale, project_out):
    inner = heads * dim_head

    def kernel(*refs):
        if project_out:
            (x_ref, w_qkv_ref, w_out_ref, b_out_ref, o_ref,
             q_s, k_s, v_s, ctx_s) = refs
        else:
            x_ref, w_qkv_ref, o_ref, q_s, k_s, v_s, ctx_s = refs
            w_out_ref = b_out_ref = None

        bblk, n, dim = x_ref.shape
        m_rows = bblk * n
        e_out = o_ref.shape[2]

        # ---- fused QKV projection: one MXU matmul over all rows of the block.
        x2d = x_ref[...].reshape(m_rows, dim)
        qkv = jnp.dot(x2d, w_qkv_ref[...],
                      preferred_element_type=jnp.float32)        # (M, 3*inner) f32
        qkv3 = qkv.reshape(bblk, n, 3 * inner)

        # ---- repack contiguous [Q | K | V] column slabs into a head-batched
        #      (heads*bblk, n, dim_head) layout with static slice copies (no
        #      transposes; the static loop is data movement only and each head
        #      is retired into VMEM scratch, bounding live ranges).
        #      The 1/sqrt(dim_head) scale is folded into q here (one
        #      (bblk, n, inner) multiply, not an (n, n) score scaling).
        q_slab = qkv3[:, :, :inner] * scale
        for h in range(heads):                      # static, small trip count
            lo = h * dim_head
            g = slice(h * bblk, (h + 1) * bblk)
            q_s[g] = q_slab[:, :, lo:lo + dim_head].astype(q_s.dtype)
            k_s[g] = qkv3[:, :, inner + lo:inner + lo + dim_head].astype(k_s.dtype)
            v_s[g] = qkv3[:, :, 2 * inner + lo:2 * inner + lo + dim_head].astype(v_s.dtype)

        q = q_s[...]
        k = k_s[...]
        v = v_s[...]

        # ---- all heads' scores / softmax / context in ONE batched pass.
        dots = jnp.einsum("gqd,gkd->gqk", q, k,
                          preferred_element_type=jnp.float32)     # (G, n, n) f32
        m_max = jnp.max(dots, axis=-1, keepdims=True)
        p = jnp.exp(dots - m_max)                                  # f32 softmax math
        denom = jnp.sum(p, axis=-1, keepdims=True)
        ctx = jnp.einsum("gqk,gkd->gqd", p.astype(v.dtype), v,
                         preferred_element_type=jnp.float32)       # (G, n, dim_head)
        # Deferred normalization: one EUP reciprocal per row, n*dim_head
        # multiplies instead of n*n divides.
        ctx = ctx * pl.reciprocal(denom, approx=True)

        # ---- scatter heads back:  'b h n d -> (b n) (h d)'  (f32 scratch).
        for h in range(heads):
            lo = h * dim_head
            ctx_s[:, lo:lo + dim_head] = (
                ctx[h * bblk:(h + 1) * bblk].reshape(m_rows, dim_head))

        # ---- single output projection with contraction depth K = inner.
        if project_out:
            out2d = jnp.dot(ctx_s[...], w_out_ref[...],
                            preferred_element_type=jnp.float32)
            out2d = out2d + b_out_ref[...]
        else:
            out2d = ctx_s[...]                      # to_out == nn.Identity()
        o_ref[...] = out2d.reshape(bblk, n, e_out).astype(o_ref.dtype)

    return kernel


# -------------------------------- Wrapper -------------------------------------
def _pick_batch_block(batch, seq_len, max_rows=1024):
    """Largest divisor of `batch` with bblk*seq_len <= max_rows, so the QKV
    matmul's M dimension gets as close to MXU-width (>=128/256 rows) as the
    batch allows while bounding per-step VMEM."""
    cap = max(1, max_rows // max(seq_len, 1))
    best = 1
    for d in range(1, batch + 1):
        if batch % d == 0 and d <= cap:
            best = d
    return best


def attention_forward(x, params, *, heads, dim_head, block_batch=None,
                      single_buffer_weights=True, vmem_limit_bytes=None):
    """x: (B, N, dim) -> (B, N, dim)   (or (B, N, inner) when to_out is Identity)."""
    B, N, dim = x.shape
    inner = heads * dim_head
    project_out = not (heads == 1 and dim_head == dim)
    scale = float(dim_head) ** -0.5

    bblk = block_batch if block_batch is not None else _pick_batch_block(B, N)
    assert B % bblk == 0, "block_batch must divide the batch"
    grid = (B // bblk,)
    e_out = params["w_out"].shape[1] if project_out else inner

    def const_spec(shape):
        # Grid-invariant blocks (weights / bias): constant index_map, so they
        # are DMA'd once; single-buffer them to halve their VMEM footprint.
        if single_buffer_weights:
            return pl.BlockSpec(shape, lambda b: (0,) * len(shape),
                                pipeline_mode=pl.Buffered(1))
        return pl.BlockSpec(shape, lambda b: (0,) * len(shape))

    in_specs = [pl.BlockSpec((bblk, N, dim), lambda b: (b, 0, 0)),   # x block
                const_spec((dim, 3 * inner))]                        # W_qkv
    args = [x, params["w_qkv"]]
    if project_out:
        in_specs += [const_spec((inner, e_out)),                     # W_out
                     const_spec((1, e_out))]                         # b_out
        args += [params["w_out"], params["b_out"].reshape(1, e_out)]

    kernel = _make_attention_kernel(heads=heads, dim_head=dim_head,
                                    scale=scale, project_out=project_out)

    # NOTE: at ViT-L scale on v7x (64 MiB VMEM / 32 MiB scoped default) shrink
    # block_batch and/or pass vmem_limit_bytes; the demo shapes fit trivially.
    return pl.pallas_call(
        kernel,
        out_shape=jax.ShapeDtypeStruct((B, N, e_out), x.dtype),
        grid=grid,
        in_specs=in_specs,
        out_specs=pl.BlockSpec((bblk, N, e_out), lambda b: (b, 0, 0)),
        scratch_shapes=[
            pltpu.VMEM((heads * bblk, N, dim_head), x.dtype),   # q (head-batched)
            pltpu.VMEM((heads * bblk, N, dim_head), x.dtype),   # k
            pltpu.VMEM((heads * bblk, N, dim_head), x.dtype),   # v
            pltpu.VMEM((bblk * N, inner), jnp.float32),         # merged context
        ],
        compiler_params=pltpu.CompilerParams(
            dimension_semantics=("parallel",),
            vmem_limit_bytes=vmem_limit_bytes),
    )(*args)


# ------------------------------- Reference -------------------------------------
def attention_ref(x, params, *, heads, dim_head):
    B, N, dim = x.shape
    inner = heads * dim_head
    scale = float(dim_head) ** -0.5
    qkv = x @ params["w_qkv"]
    q, k, v = jnp.split(qkv, 3, axis=-1)

    def split_heads(t):
        return t.reshape(B, N, heads, dim_head).transpose(0, 2, 1, 3)

    q, k, v = map(split_heads, (q, k, v))
    dots = jnp.einsum("bhqd,bhkd->bhqk", q, k) * scale
    attn = jax.nn.softmax(dots, axis=-1)
    out = jnp.einsum("bhqk,bhkd->bhqd", attn, v)
    out = out.transpose(0, 2, 1, 3).reshape(B, N, inner)
    if not (heads == 1 and dim_head == dim):
        out = out @ params["w_out"] + params["b_out"]
    return out


if __name__ == "__main__":
    B, N, dim = 2, 8, 32          # batch, sequence, embedding
    heads, dim_head = 4, 8        # inner_dim = 32, project_out = True
    inner = heads * dim_head

    key = jax.random.PRNGKey(0)
    kx, k1, k2, k3 = jax.random.split(key, 4)

    x = jax.random.normal(kx, (B, N, dim), dtype=jnp.float32)
    params = {
        "w_qkv": 0.02 * jax.random.normal(k1, (dim, 3 * inner), dtype=jnp.float32),
        "w_out": 0.02 * jax.random.normal(k2, (inner, dim), dtype=jnp.float32),
        "b_out": 0.02 * jax.random.normal(k3, (dim,), dtype=jnp.float32),
    }

    try:
        out = attention_forward(x, params, heads=heads, dim_head=dim_head)
    except Exception:
        # pl.Buffered(1) single-buffering of the constant weight blocks is a
        # pure-VMEM optimization; fall back to default buffering if this jax
        # version rejects the pipeline_mode kwarg.  A genuine kernel bug would
        # fail identically on this path and still surface.
        out = attention_forward(x, params, heads=heads, dim_head=dim_head,
                                single_buffer_weights=False)
    out = jax.block_until_ready(out)

    ref = attention_ref(x, params, heads=heads, dim_head=dim_head)
    assert out.shape == (B, N, dim)
    # pl.reciprocal(approx=True) introduces a tiny (attention-tolerable) drift
    # vs the exact-division reference; all matmuls/softmax accumulate in f32.
    assert jnp.allclose(out, ref, atol=2e-3, rtol=2e-3), "mismatch vs reference"

    print("KERNEL_OK")
</pallas_src>

<mosaic_0001>
module attributes {stable_mosaic.version = 11 : i64} {
  func.func @kernel(%arg0: i32, %arg1: memref<2x8x32xf32, #tpu.memory_space<vmem>>, %arg2: memref<32x96xf32, #tpu.memory_space<vmem>>, %arg3: memref<32x32xf32, #tpu.memory_space<vmem>>, %arg4: memref<1x32xf32, #tpu.memory_space<vmem>>, %arg5: memref<2x8x32xf32, #tpu.memory_space<vmem>>, %arg6: memref<8x8x8xf32, #tpu.memory_space<vmem>>, %arg7: memref<8x8x8xf32, #tpu.memory_space<vmem>>, %arg8: memref<8x8x8xf32, #tpu.memory_space<vmem>>, %arg9: memref<16x32xf32, #tpu.memory_space<vmem>>) attributes {dimension_semantics = [#tpu.dimension_semantics<parallel>], iteration_bounds = array<i64: 1>, scalar_prefetch = 0 : i64, scratch_operands = 4 : i64, tpu.core_type = #tpu.core_type<tc>, window_params = [{transform_indices = @transform_0, window_bounds = array<i64: 2, 8, 32>}, {pipeline_mode = #tpu.pipeline_mode<synchronous>, transform_indices = @transform_1, window_bounds = array<i64: 32, 96>}, {pipeline_mode = #tpu.pipeline_mode<synchronous>, transform_indices = @transform_2, window_bounds = array<i64: 32, 32>}, {pipeline_mode = #tpu.pipeline_mode<synchronous>, transform_indices = @transform_3, window_bounds = array<i64: 1, 32>}, {transform_indices = @transform_4, window_bounds = array<i64: 2, 8, 32>}]} {
    %c0 = arith.constant 0 : index
    %c0_0 = arith.constant 0 : index
    %c0_1 = arith.constant 0 : index
    %0 = vector.load %arg1[%c0, %c0_0, %c0_1] : memref<2x8x32xf32, #tpu.memory_space<vmem>>, vector<2x8x32xf32>
    %1 = vector.shape_cast %0 : vector<2x8x32xf32> to vector<16x32xf32>
    %c0_2 = arith.constant 0 : index
    %c0_3 = arith.constant 0 : index
    %2 = vector.load %arg2[%c0_2, %c0_3] : memref<32x96xf32, #tpu.memory_space<vmem>>, vector<32x96xf32>
    %cst = arith.constant dense<0.000000e+00> : vector<16x96xf32>
    %3 = tpu.matmul %1, %2, %cst {dimension_numbers = #tpu.dot_dimension_numbers<[1], [0], [0], [1], [0, 0, 1, 1], [], []>} : vector<16x32xf32>, vector<32x96xf32>, vector<16x96xf32> -> vector<16x96xf32>
    %4 = vector.shape_cast %3 : vector<16x96xf32> to vector<2x8x96xf32>
    %5 = vector.extract_strided_slice %4 {offsets = [0, 0, 0], sizes = [2, 8, 32], strides = [1, 1, 1]} : vector<2x8x96xf32> to vector<2x8x32xf32>
    %cst_4 = arith.constant 0.353553385 : f32
    %6 = vector.broadcast %cst_4 : f32 to vector<2x8x32xf32>
    %7 = arith.mulf %5, %6 : vector<2x8x32xf32>
    %8 = vector.extract_strided_slice %7 {offsets = [0, 0, 0], sizes = [2, 8, 8], strides = [1, 1, 1]} : vector<2x8x32xf32> to vector<2x8x8xf32>
    %c0_5 = arith.constant 0 : index
    %c0_6 = arith.constant 0 : index
    %c0_7 = arith.constant 0 : index
    %9 = vector.load %arg6[%c0_5, %c0_6, %c0_7] : memref<8x8x8xf32, #tpu.memory_space<vmem>>, vector<2x8x8xf32>
    tpu.vector_store %arg6[%c0_5, %c0_6, %c0_7], %8 {strides = array<i32>} : memref<8x8x8xf32, #tpu.memory_space<vmem>>, vector<2x8x8xf32>,
    %10 = vector.extract_strided_slice %4 {offsets = [0, 0, 32], sizes = [2, 8, 8], strides = [1, 1, 1]} : vector<2x8x96xf32> to vector<2x8x8xf32>
    %c0_8 = arith.constant 0 : index
    %c0_9 = arith.constant 0 : index
    %c0_10 = arith.constant 0 : index
    %11 = vector.load %arg7[%c0_8, %c0_9, %c0_10] : memref<8x8x8xf32, #tpu.memory_space<vmem>>, vector<2x8x8xf32>
    tpu.vector_store %arg7[%c0_8, %c0_9, %c0_10], %10 {strides = array<i32>} : memref<8x8x8xf32, #tpu.memory_space<vmem>>, vector<2x8x8xf32>,
    %12 = vector.extract_strided_slice %4 {offsets = [0, 0, 64], sizes = [2, 8, 8], strides = [1, 1, 1]} : vector<2x8x96xf32> to vector<2x8x8xf32>
    %c0_11 = arith.constant 0 : index
    %c0_12 = arith.constant 0 : index
    %c0_13 = arith.constant 0 : index
    %13 = vector.load %arg8[%c0_11, %c0_12, %c0_13] : memref<8x8x8xf32, #tpu.memory_space<vmem>>, vector<2x8x8xf32>
    tpu.vector_store %arg8[%c0_11, %c0_12, %c0_13], %12 {strides = array<i32>} : memref<8x8x8xf32, #tpu.memory_space<vmem>>, vector<2x8x8xf32>,
    %14 = vector.extract_strided_slice %7 {offsets = [0, 0, 8], sizes = [2, 8, 8], strides = [1, 1, 1]} : vector<2x8x32xf32> to vector<2x8x8xf32>
    %c2 = arith.constant 2 : index
    %c0_14 = arith.constant 0 : index
    %c0_15 = arith.constant 0 : index
    %15 = vector.load %arg6[%c2, %c0_14, %c0_15] : memref<8x8x8xf32, #tpu.memory_space<vmem>>, vector<2x8x8xf32>
    tpu.vector_store %arg6[%c2, %c0_14, %c0_15], %14 {strides = array<i32>} : memref<8x8x8xf32, #tpu.memory_space<vmem>>, vector<2x8x8xf32>,
    %16 = vector.extract_strided_slice %4 {offsets = [0, 0, 40], sizes = [2, 8, 8], strides = [1, 1, 1]} : vector<2x8x96xf32> to vector<2x8x8xf32>
    %c2_16 = arith.constant 2 : index
    %c0_17 = arith.constant 0 : index
    %c0_18 = arith.constant 0 : index
    %17 = vector.load %arg7[%c2_16, %c0_17, %c0_18] : memref<8x8x8xf32, #tpu.memory_space<vmem>>, vector<2x8x8xf32>
    tpu.vector_store %arg7[%c2_16, %c0_17, %c0_18], %16 {strides = array<i32>} : memref<8x8x8xf32, #tpu.memory_space<vmem>>, vector<2x8x8xf32>,
    %18 = vector.extract_strided_slice %4 {offsets = [0, 0, 72], sizes = [2, 8, 8], strides = [1, 1, 1]} : vector<2x8x96xf32> to vector<2x8x8xf32>
    %c2_19 = arith.constant 2 : index
    %c0_20 = arith.constant 0 : index
    %c0_21 = arith.constant 0 : index
    %19 = vector.load %arg8[%c2_19, %c0_20, %c0_21] : memref<8x8x8xf32, #tpu.memory_space<vmem>>, vector<2x8x8xf32>
    tpu.vector_store %arg8[%c2_19, %c0_20, %c0_21], %18 {strides = array<i32>} : memref<8x8x8xf32, #tpu.memory_space<vmem>>, vector<2x8x8xf32>,
    %20 = vector.extract_strided_slice %7 {offsets = [0, 0, 16], sizes = [2, 8, 8], strides = [1, 1, 1]} : vector<2x8x32xf32> to vector<2x8x8xf32>
    %c4 = arith.constant 4 : index
    %c0_22 = arith.constant 0 : index
    %c0_23 = arith.constant 0 : index
    %21 = vector.load %arg6[%c4, %c0_22, %c0_23] : memref<8x8x8xf32, #tpu.memory_space<vmem>>, vector<2x8x8xf32>
    tpu.vector_store %arg6[%c4, %c0_22, %c0_23], %20 {strides = array<i32>} : memref<8x8x8xf32, #tpu.memory_space<vmem>>, vector<2x8x8xf32>,
    %22 = vector.extract_strided_slice %4 {offsets = [0, 0, 48], sizes = [2, 8, 8], strides = [1, 1, 1]} : vector<2x8x96xf32> to vector<2x8x8xf32>
    %c4_24 = arith.constant 4 : index
    %c0_25 = arith.constant 0 : index
    %c0_26 = arith.constant 0 : index
    %23 = vector.load %arg7[%c4_24, %c0_25, %c0_26] : memref<8x8x8xf32, #tpu.memory_space<vmem>>, vector<2x8x8xf32>
    tpu.vector_store %arg7[%c4_24, %c0_25, %c0_26], %22 {strides = array<i32>} : memref<8x8x8xf32, #tpu.memory_space<vmem>>, vector<2x8x8xf32>,
    %24 = vector.extract_strided_slice %4 {offsets = [0, 0, 80], sizes = [2, 8, 8], strides = [1, 1, 1]} : vector<2x8x96xf32> to vector<2x8x8xf32>
    %c4_27 = arith.constant 4 : index
    %c0_28 = arith.constant 0 : index
    %c0_29 = arith.constant 0 : index
    %25 = vector.load %arg8[%c4_27, %c0_28, %c0_29] : memref<8x8x8xf32, #tpu.memory_space<vmem>>, vector<2x8x8xf32>
    tpu.vector_store %arg8[%c4_27, %c0_28, %c0_29], %24 {strides = array<i32>} : memref<8x8x8xf32, #tpu.memory_space<vmem>>, vector<2x8x8xf32>,
    %26 = vector.extract_strided_slice %7 {offsets = [0, 0, 24], sizes = [2, 8, 8], strides = [1, 1, 1]} : vector<2x8x32xf32> to vector<2x8x8xf32>
    %c6 = arith.constant 6 : index
    %c0_30 = arith.constant 0 : index
    %c0_31 = arith.constant 0 : index
    %27 = vector.load %arg6[%c6, %c0_30, %c0_31] : memref<8x8x8xf32, #tpu.memory_space<vmem>>, vector<2x8x8xf32>
    tpu.vector_store %arg6[%c6, %c0_30, %c0_31], %26 {strides = array<i32>} : memref<8x8x8xf32, #tpu.memory_space<vmem>>, vector<2x8x8xf32>,
    %28 = vector.extract_strided_slice %4 {offsets = [0, 0, 56], sizes = [2, 8, 8], strides = [1, 1, 1]} : vector<2x8x96xf32> to vector<2x8x8xf32>
    %c6_32 = arith.constant 6 : index
    %c0_33 = arith.constant 0 : index
    %c0_34 = arith.constant 0 : index
    %29 = vector.load %arg7[%c6_32, %c0_33, %c0_34] : memref<8x8x8xf32, #tpu.memory_space<vmem>>, vector<2x8x8xf32>
    tpu.vector_store %arg7[%c6_32, %c0_33, %c0_34], %28 {strides = array<i32>} : memref<8x8x8xf32, #tpu.memory_space<vmem>>, vector<2x8x8xf32>,
    %30 = vector.extract_strided_slice %4 {offsets = [0, 0, 88], sizes = [2, 8, 8], strides = [1, 1, 1]} : vector<2x8x96xf32> to vector<2x8x8xf32>
    %c6_35 = arith.constant 6 : index
    %c0_36 = arith.constant 0 : index
    %c0_37 = arith.constant 0 : index
    %31 = vector.load %arg8[%c6_35, %c0_36, %c0_37] : memref<8x8x8xf32, #tpu.memory_space<vmem>>, vector<2x8x8xf32>
    tpu.vector_store %arg8[%c6_35, %c0_36, %c0_37], %30 {strides = array<i32>} : memref<8x8x8xf32, #tpu.memory_space<vmem>>, vector<2x8x8xf32>,
    %c0_38 = arith.constant 0 : index
    %c0_39 = arith.constant 0 : index
    %c0_40 = arith.constant 0 : index
    %32 = vector.load %arg6[%c0_38, %c0_39, %c0_40] : memref<8x8x8xf32, #tpu.memory_space<vmem>>, vector<8x8x8xf32>
    %c0_41 = arith.constant 0 : index
    %c0_42 = arith.constant 0 : index
    %c0_43 = arith.constant 0 : index
    %33 = vector.load %arg7[%c0_41, %c0_42, %c0_43] : memref<8x8x8xf32, #tpu.memory_space<vmem>>, vector<8x8x8xf32>
    %c0_44 = arith.constant 0 : index
    %c0_45 = arith.constant 0 : index
    %c0_46 = arith.constant 0 : index
    %34 = vector.load %arg8[%c0_44, %c0_45, %c0_46] : memref<8x8x8xf32, #tpu.memory_space<vmem>>, vector<8x8x8xf32>
    "tpu.trace_start"() <{level = 10 : i32, message = "gqd,gkd->gqk"}> : () -> ()
    %cst_47 = arith.constant dense<0.000000e+00> : vector<8x8x8xf32>
    %35 = tpu.matmul %32, %33, %cst_47 {dimension_numbers = #tpu.dot_dimension_numbers<[2], [2], [1], [1], [0, 0, 0, 1, 1, 1], [0], [0]>} : vector<8x8x8xf32>, vector<8x8x8xf32>, vector<8x8x8xf32> -> vector<8x8x8xf32>
    "tpu.trace_stop"() : () -> ()
    %cst_48 = arith.constant dense<0xFF800000> : vector<8x8xf32>
    %36 = vector.multi_reduction <maximumf>, %35, %cst_48 [2] : vector<8x8x8xf32> to vector<8x8xf32>
    %37 = vector.shape_cast %36 : vector<8x8xf32> to vector<8x8x1xf32>
    %38 = vector.broadcast %37 : vector<8x8x1xf32> to vector<8x8x8xf32>
    %39 = arith.subf %35, %38 : vector<8x8x8xf32>
    %40 = math.exp %39 : vector<8x8x8xf32>
    %cst_49 = arith.constant dense<0.000000e+00> : vector<8x8xf32>
    %41 = vector.multi_reduction <add>, %40, %cst_49 [2] : vector<8x8x8xf32> to vector<8x8xf32>
    %42 = vector.shape_cast %41 : vector<8x8xf32> to vector<8x8x1xf32>
    "tpu.trace_start"() <{level = 10 : i32, message = "gqk,gkd->gqd"}> : () -> ()
    %cst_50 = arith.constant dense<0.000000e+00> : vector<8x8x8xf32>
    %43 = tpu.matmul %40, %34, %cst_50 {dimension_numbers = #tpu.dot_dimension_numbers<[2], [1], [1], [2], [0, 0, 0, 1, 1, 2], [0], [0]>} : vector<8x8x8xf32>, vector<8x8x8xf32>, vector<8x8x8xf32> -> vector<8x8x8xf32>
    "tpu.trace_stop"() : () -> ()
    %44 = tpu.reciprocal %42 {approx = true} : vector<8x8x1xf32> -> vector<8x8x1xf32>
    %45 = vector.broadcast %44 : vector<8x8x1xf32> to vector<8x8x8xf32>
    %46 = arith.mulf %43, %45 : vector<8x8x8xf32>
    %47 = vector.extract_strided_slice %46 {offsets = [0, 0, 0], sizes = [2, 8, 8], strides = [1, 1, 1]} : vector<8x8x8xf32> to vector<2x8x8xf32>
    %48 = vector.shape_cast %47 : vector<2x8x8xf32> to vector<16x8xf32>
    %c0_51 = arith.constant 0 : index
    %c0_52 = arith.constant 0 : index
    %49 = vector.load %arg9[%c0_51, %c0_52] : memref<16x32xf32, #tpu.memory_space<vmem>>, vector<16x8xf32>
    tpu.vector_store %arg9[%c0_51, %c0_52], %48 {strides = array<i32>} : memref<16x32xf32, #tpu.memory_space<vmem>>, vector<16x8xf32>,
    %50 = vector.extract_strided_slice %46 {offsets = [2, 0, 0], sizes = [2, 8, 8], strides = [1, 1, 1]} : vector<8x8x8xf32> to vector<2x8x8xf32>
    %51 = vector.shape_cast %50 : vector<2x8x8xf32> to vector<16x8xf32>
    %c0_53 = arith.constant 0 : index
    %c8 = arith.constant 8 : index
    %52 = vector.load %arg9[%c0_53, %c8] : memref<16x32xf32, #tpu.memory_space<vmem>>, vector<16x8xf32>
    tpu.vector_store %arg9[%c0_53, %c8], %51 {strides = array<i32>} : memref<16x32xf32, #tpu.memory_space<vmem>>, vector<16x8xf32>,
    %53 = vector.extract_strided_slice %46 {offsets = [4, 0, 0], sizes = [2, 8, 8], strides = [1, 1, 1]} : vector<8x8x8xf32> to vector<2x8x8xf32>
    %54 = vector.shape_cast %53 : vector<2x8x8xf32> to vector<16x8xf32>
    %c0_54 = arith.constant 0 : index
    %c16 = arith.constant 16 : index
    %55 = vector.load %arg9[%c0_54, %c16] : memref<16x32xf32, #tpu.memory_space<vmem>>, vector<16x8xf32>
    tpu.vector_store %arg9[%c0_54, %c16], %54 {strides = array<i32>} : memref<16x32xf32, #tpu.memory_space<vmem>>, vector<16x8xf32>,
    %56 = vector.extract_strided_slice %46 {offsets = [6, 0, 0], sizes = [2, 8, 8], strides = [1, 1, 1]} : vector<8x8x8xf32> to vector<2x8x8xf32>
    %57 = vector.shape_cast %56 : vector<2x8x8xf32> to vector<16x8xf32>
    %c0_55 = arith.constant 0 : index
    %c24 = arith.constant 24 : index
    %58 = vector.load %arg9[%c0_55, %c24] : memref<16x32xf32, #tpu.memory_space<vmem>>, vector<16x8xf32>
    tpu.vector_store %arg9[%c0_55, %c24], %57 {strides = array<i32>} : memref<16x32xf32, #tpu.memory_space<vmem>>, vector<16x8xf32>,
    %c0_56 = arith.constant 0 : index
    %c0_57 = arith.constant 0 : index
    %59 = vector.load %arg9[%c0_56, %c0_57] : memref<16x32xf32, #tpu.memory_space<vmem>>, vector<16x32xf32>
    %c0_58 = arith.constant 0 : index
    %c0_59 = arith.constant 0 : index
    %60 = vector.load %arg3[%c0_58, %c0_59] : memref<32x32xf32, #tpu.memory_space<vmem>>, vector<32x32xf32>
    %cst_60 = arith.constant dense<0.000000e+00> : vector<16x32xf32>
    %61 = tpu.matmul %59, %60, %cst_60 {dimension_numbers = #tpu.dot_dimension_numbers<[1], [0], [0], [1], [0, 0, 1, 1], [], []>} : vector<16x32xf32>, vector<32x32xf32>, vector<16x32xf32> -> vector<16x32xf32>
    %c0_61 = arith.constant 0 : index
    %c0_62 = arith.constant 0 : index
    %62 = vector.load %arg4[%c0_61, %c0_62] : memref<1x32xf32, #tpu.memory_space<vmem>>, vector<1x32xf32>
    %63 = vector.broadcast %62 : vector<1x32xf32> to vector<16x32xf32>
    %64 = arith.addf %61, %63 : vector<16x32xf32>
    %65 = vector.shape_cast %64 : vector<16x32xf32> to vector<2x8x32xf32>
    %c0_63 = arith.constant 0 : index
    %c0_64 = arith.constant 0 : index
    %c0_65 = arith.constant 0 : index
    %66 = vector.load %arg5[%c0_63, %c0_64, %c0_65] : memref<2x8x32xf32, #tpu.memory_space<vmem>>, vector<2x8x32xf32>
    tpu.vector_store %arg5[%c0_63, %c0_64, %c0_65], %65 {strides = array<i32>} : memref<2x8x32xf32, #tpu.memory_space<vmem>>, vector<2x8x32xf32>,
    return
  }
  func.func @transform_0(%arg0: i32) -> (i32, i32, i32) {
    %c0_i32 = arith.constant 0 : i32
    %c0_i32_0 = arith.constant 0 : i32
    %c0_i32_1 = arith.constant 0 : i32
    return %arg0, %c0_i32, %c0_i32_0 : i32, i32, i32
  }
  func.func @transform_1(%arg0: i32) -> (i32, i32) {
    %c0_i32 = arith.constant 0 : i32
    %c0_i32_0 = arith.constant 0 : i32
    %c0_i32_1 = arith.constant 0 : i32
    return %c0_i32, %c0_i32_0 : i32, i32
  }
  func.func @transform_2(%arg0: i32) -> (i32, i32) {
    %c0_i32 = arith.constant 0 : i32
    %c0_i32_0 = arith.constant 0 : i32
    %c0_i32_1 = arith.constant 0 : i32
    return %c0_i32, %c0_i32_0 : i32, i32
  }
  func.func @transform_3(%arg0: i32) -> (i32, i32) {
    %c0_i32 = arith.constant 0 : i32
    %c0_i32_0 = arith.constant 0 : i32
    %c0_i32_1 = arith.constant 0 : i32
    return %c0_i32, %c0_i32_0 : i32, i32
  }
  func.func @transform_4(%arg0: i32) -> (i32, i32, i32) {
    %c0_i32 = arith.constant 0 : i32
    %c0_i32_0 = arith.constant 0 : i32
    %c0_i32_1 = arith.constant 0 : i32
    return %arg0, %c0_i32, %c0_i32_0 : i32, i32, i32
  }
}

module attributes {stable_mosaic.version = 11 : i64} {
  func.func @kernel(%arg0: i32, %arg1: memref<2x8x32xf32, #tpu.memory_space<vmem>>, %arg2: memref<32x96xf32, #tpu.memory_space<vmem>>, %arg3: memref<32x32xf32, #tpu.memory_space<vmem>>, %arg4: memref<1x32xf32, #tpu.memory_space<vmem>>, %arg5: memref<2x8x32xf32, #tpu.memory_space<vmem>>, %arg6: memref<8x8x8xf32, #tpu.memory_space<vmem>>, %arg7: memref<8x8x8xf32, #tpu.memory_space<vmem>>, %arg8: memref<8x8x8xf32, #tpu.memory_space<vmem>>, %arg9: memref<16x32xf32, #tpu.memory_space<vmem>>) attributes {dimension_semantics = [#tpu.dimension_semantics<parallel>], iteration_bounds = array<i64: 1>, scalar_prefetch = 0 : i64, scratch_operands = 4 : i64, tpu.core_type = #tpu.core_type<tc>, window_params = [{transform_indices = @transform_0, window_bounds = array<i64: 2, 8, 32>}, {pipeline_mode = #tpu.pipeline_mode<synchronous>, transform_indices = @transform_1, window_bounds = array<i64: 32, 96>}, {pipeline_mode = #tpu.pipeline_mode<synchronous>, transform_indices = @transform_2, window_bounds = array<i64: 32, 32>}, {pipeline_mode = #tpu.pipeline_mode<synchronous>, transform_indices = @transform_3, window_bounds = array<i64: 1, 32>}, {transform_indices = @transform_4, window_bounds = array<i64: 2, 8, 32>}]} {
    %c0 = arith.constant 0 : index
    %c0_0 = arith.constant 0 : index
    %c0_1 = arith.constant 0 : index
    %0 = vector.load %arg1[%c0, %c0_0, %c0_1] : memref<2x8x32xf32, #tpu.memory_space<vmem>>, vector<2x8x32xf32>
    %1 = vector.shape_cast %0 : vector<2x8x32xf32> to vector<16x32xf32>
    %c0_2 = arith.constant 0 : index
    %c0_3 = arith.constant 0 : index
    %2 = vector.load %arg2[%c0_2, %c0_3] : memref<32x96xf32, #tpu.memory_space<vmem>>, vector<32x96xf32>
    %cst = arith.constant dense<0.000000e+00> : vector<16x96xf32>
    %3 = tpu.matmul %1, %2, %cst {dimension_numbers = #tpu.dot_dimension_numbers<[1], [0], [0], [1], [0, 0, 1, 1], [], []>} : vector<16x32xf32>, vector<32x96xf32>, vector<16x96xf32> -> vector<16x96xf32>
    %4 = vector.shape_cast %3 : vector<16x96xf32> to vector<2x8x96xf32>
    %5 = vector.extract_strided_slice %4 {offsets = [0, 0, 0], sizes = [2, 8, 32], strides = [1, 1, 1]} : vector<2x8x96xf32> to vector<2x8x32xf32>
    %cst_4 = arith.constant 0.353553385 : f32
    %6 = vector.broadcast %cst_4 : f32 to vector<2x8x32xf32>
    %7 = arith.mulf %5, %6 : vector<2x8x32xf32>
    %8 = vector.extract_strided_slice %7 {offsets = [0, 0, 0], sizes = [2, 8, 8], strides = [1, 1, 1]} : vector<2x8x32xf32> to vector<2x8x8xf32>
    %c0_5 = arith.constant 0 : index
    %c0_6 = arith.constant 0 : index
    %c0_7 = arith.constant 0 : index
    %9 = vector.load %arg6[%c0_5, %c0_6, %c0_7] : memref<8x8x8xf32, #tpu.memory_space<vmem>>, vector<2x8x8xf32>
    tpu.vector_store %arg6[%c0_5, %c0_6, %c0_7], %8 {strides = array<i32>} : memref<8x8x8xf32, #tpu.memory_space<vmem>>, vector<2x8x8xf32>,
    %10 = vector.extract_strided_slice %4 {offsets = [0, 0, 32], sizes = [2, 8, 8], strides = [1, 1, 1]} : vector<2x8x96xf32> to vector<2x8x8xf32>
    %c0_8 = arith.constant 0 : index
    %c0_9 = arith.constant 0 : index
    %c0_10 = arith.constant 0 : index
    %11 = vector.load %arg7[%c0_8, %c0_9, %c0_10] : memref<8x8x8xf32, #tpu.memory_space<vmem>>, vector<2x8x8xf32>
    tpu.vector_store %arg7[%c0_8, %c0_9, %c0_10], %10 {strides = array<i32>} : memref<8x8x8xf32, #tpu.memory_space<vmem>>, vector<2x8x8xf32>,
    %12 = vector.extract_strided_slice %4 {offsets = [0, 0, 64], sizes = [2, 8, 8], strides = [1, 1, 1]} : vector<2x8x96xf32> to vector<2x8x8xf32>
    %c0_11 = arith.constant 0 : index
    %c0_12 = arith.constant 0 : index
    %c0_13 = arith.constant 0 : index
    %13 = vector.load %arg8[%c0_11, %c0_12, %c0_13] : memref<8x8x8xf32, #tpu.memory_space<vmem>>, vector<2x8x8xf32>
    tpu.vector_store %arg8[%c0_11, %c0_12, %c0_13], %12 {strides = array<i32>} : memref<8x8x8xf32, #tpu.memory_space<vmem>>, vector<2x8x8xf32>,
    %14 = vector.extract_strided_slice %7 {offsets = [0, 0, 8], sizes = [2, 8, 8], strides = [1, 1, 1]} : vector<2x8x32xf32> to vector<2x8x8xf32>
    %c2 = arith.constant 2 : index
    %c0_14 = arith.constant 0 : index
    %c0_15 = arith.constant 0 : index
    %15 = vector.load %arg6[%c2, %c0_14, %c0_15] : memref<8x8x8xf32, #tpu.memory_space<vmem>>, vector<2x8x8xf32>
    tpu.vector_store %arg6[%c2, %c0_14, %c0_15], %14 {strides = array<i32>} : memref<8x8x8xf32, #tpu.memory_space<vmem>>, vector<2x8x8xf32>,
    %16 = vector.extract_strided_slice %4 {offsets = [0, 0, 40], sizes = [2, 8, 8], strides = [1, 1, 1]} : vector<2x8x96xf32> to vector<2x8x8xf32>
    %c2_16 = arith.constant 2 : index
    %c0_17 = arith.constant 0 : index
    %c0_18 = arith.constant 0 : index
    %17 = vector.load %arg7[%c2_16, %c0_17, %c0_18] : memref<8x8x8xf32, #tpu.memory_space<vmem>>, vector<2x8x8xf32>
    tpu.vector_store %arg7[%c2_16, %c0_17, %c0_18], %16 {strides = array<i32>} : memref<8x8x8xf32, #tpu.memory_space<vmem>>, vector<2x8x8xf32>,
    %18 = vector.extract_strided_slice %4 {offsets = [0, 0, 72], sizes = [2, 8, 8], strides = [1, 1, 1]} : vector<2x8x96xf32> to vector<2x8x8xf32>
    %c2_19 = arith.constant 2 : index
    %c0_20 = arith.constant 0 : index
    %c0_21 = arith.constant 0 : index
    %19 = vector.load %arg8[%c2_19, %c0_20, %c0_21] : memref<8x8x8xf32, #tpu.memory_space<vmem>>, vector<2x8x8xf32>
    tpu.vector_store %arg8[%c2_19, %c0_20, %c0_21], %18 {strides = array<i32>} : memref<8x8x8xf32, #tpu.memory_space<vmem>>, vector<2x8x8xf32>,
    %20 = vector.extract_strided_slice %7 {offsets = [0, 0, 16], sizes = [2, 8, 8], strides = [1, 1, 1]} : vector<2x8x32xf32> to vector<2x8x8xf32>
    %c4 = arith.constant 4 : index
    %c0_22 = arith.constant 0 : index
    %c0_23 = arith.constant 0 : index
    %21 = vector.load %arg6[%c4, %c0_22, %c0_23] : memref<8x8x8xf32, #tpu.memory_space<vmem>>, vector<2x8x8xf32>
    tpu.vector_store %arg6[%c4, %c0_22, %c0_23], %20 {strides = array<i32>} : memref<8x8x8xf32, #tpu.memory_space<vmem>>, vector<2x8x8xf32>,
    %22 = vector.extract_strided_slice %4 {offsets = [0, 0, 48], sizes = [2, 8, 8], strides = [1, 1, 1]} : vector<2x8x96xf32> to vector<2x8x8xf32>
    %c4_24 = arith.constant 4 : index
    %c0_25 = arith.constant 0 : index
    %c0_26 = arith.constant 0 : index
    %23 = vector.load %arg7[%c4_24, %c0_25, %c0_26] : memref<8x8x8xf32, #tpu.memory_space<vmem>>, vector<2x8x8xf32>
    tpu.vector_store %arg7[%c4_24, %c0_25, %c0_26], %22 {strides = array<i32>} : memref<8x8x8xf32, #tpu.memory_space<vmem>>, vector<2x8x8xf32>,
    %24 = vector.extract_strided_slice %4 {offsets = [0, 0, 80], sizes = [2, 8, 8], strides = [1, 1, 1]} : vector<2x8x96xf32> to vector<2x8x8xf32>
    %c4_27 = arith.constant 4 : index
    %c0_28 = arith.constant 0 : index
    %c0_29 = arith.constant 0 : index
    %25 = vector.load %arg8[%c4_27, %c0_28, %c0_29] : memref<8x8x8xf32, #tpu.memory_space<vmem>>, vector<2x8x8xf32>
    tpu.vector_store %arg8[%c4_27, %c0_28, %c0_29], %24 {strides = array<i32>} : memref<8x8x8xf32, #tpu.memory_space<vmem>>, vector<2x8x8xf32>,
    %26 = vector.extract_strided_slice %7 {offsets = [0, 0, 24], sizes = [2, 8, 8], strides = [1, 1, 1]} : vector<2x8x32xf32> to vector<2x8x8xf32>
    %c6 = arith.constant 6 : index
    %c0_30 = arith.constant 0 : index
    %c0_31 = arith.constant 0 : index
    %27 = vector.load %arg6[%c6, %c0_30, %c0_31] : memref<8x8x8xf32, #tpu.memory_space<vmem>>, vector<2x8x8xf32>
    tpu.vector_store %arg6[%c6, %c0_30, %c0_31], %26 {strides = array<i32>} : memref<8x8x8xf32, #tpu.memory_space<vmem>>, vector<2x8x8xf32>,
    %28 = vector.extract_strided_slice %4 {offsets = [0, 0, 56], sizes = [2, 8, 8], strides = [1, 1, 1]} : vector<2x8x96xf32> to vector<2x8x8xf32>
    %c6_32 = arith.constant 6 : index
    %c0_33 = arith.constant 0 : index
    %c0_34 = arith.constant 0 : index
    %29 = vector.load %arg7[%c6_32, %c0_33, %c0_34] : memref<8x8x8xf32, #tpu.memory_space<vmem>>, vector<2x8x8xf32>
    tpu.vector_store %arg7[%c6_32, %c0_33, %c0_34], %28 {strides = array<i32>} : memref<8x8x8xf32, #tpu.memory_space<vmem>>, vector<2x8x8xf32>,
    %30 = vector.extract_strided_slice %4 {offsets = [0, 0, 88], sizes = [2, 8, 8], strides = [1, 1, 1]} : vector<2x8x96xf32> to vector<2x8x8xf32>
    %c6_35 = arith.constant 6 : index
    %c0_36 = arith.constant 0 : index
    %c0_37 = arith.constant 0 : index
    %31 = vector.load %arg8[%c6_35, %c0_36, %c0_37] : memref<8x8x8xf32, #tpu.memory_space<vmem>>, vector<2x8x8xf32>
    tpu.vector_store %arg8[%c6_35, %c0_36, %c0_37], %30 {strides = array<i32>} : memref<8x8x8xf32, #tpu.memory_space<vmem>>, vector<2x8x8xf32>,
    %c0_38 = arith.constant 0 : index
    %c0_39 = arith.constant 0 : index
    %c0_40 = arith.constant 0 : index
    %32 = vector.load %arg6[%c0_38, %c0_39, %c0_40] : memref<8x8x8xf32, #tpu.memory_space<vmem>>, vector<8x8x8xf32>
    %c0_41 = arith.constant 0 : index
    %c0_42 = arith.constant 0 : index
    %c0_43 = arith.constant 0 : index
    %33 = vector.load %arg7[%c0_41, %c0_42, %c0_43] : memref<8x8x8xf32, #tpu.memory_space<vmem>>, vector<8x8x8xf32>
    %c0_44 = arith.constant 0 : index
    %c0_45 = arith.constant 0 : index
    %c0_46 = arith.constant 0 : index
    %34 = vector.load %arg8[%c0_44, %c0_45, %c0_46] : memref<8x8x8xf32, #tpu.memory_space<vmem>>, vector<8x8x8xf32>
    "tpu.trace_start"() <{level = 10 : i32, message = "gqd,gkd->gqk"}> : () -> ()
    %cst_47 = arith.constant dense<0.000000e+00> : vector<8x8x8xf32>
    %35 = tpu.matmul %32, %33, %cst_47 {dimension_numbers = #tpu.dot_dimension_numbers<[2], [2], [1], [1], [0, 0, 0, 1, 1, 1], [0], [0]>} : vector<8x8x8xf32>, vector<8x8x8xf32>, vector<8x8x8xf32> -> vector<8x8x8xf32>
    "tpu.trace_stop"() : () -> ()
    %cst_48 = arith.constant dense<0xFF800000> : vector<8x8xf32>
    %36 = vector.multi_reduction <maximumf>, %35, %cst_48 [2] : vector<8x8x8xf32> to vector<8x8xf32>
    %37 = vector.shape_cast %36 : vector<8x8xf32> to vector<8x8x1xf32>
    %38 = vector.broadcast %37 : vector<8x8x1xf32> to vector<8x8x8xf32>
    %39 = arith.subf %35, %38 : vector<8x8x8xf32>
    %40 = math.exp %39 : vector<8x8x8xf32>
    %cst_49 = arith.constant dense<0.000000e+00> : vector<8x8xf32>
    %41 = vector.multi_reduction <add>, %40, %cst_49 [2] : vector<8x8x8xf32> to vector<8x8xf32>
    %42 = vector.shape_cast %41 : vector<8x8xf32> to vector<8x8x1xf32>
    "tpu.trace_start"() <{level = 10 : i32, message = "gqk,gkd->gqd"}> : () -> ()
    %cst_50 = arith.constant dense<0.000000e+00> : vector<8x8x8xf32>
    %43 = tpu.matmul %40, %34, %cst_50 {dimension_numbers = #tpu.dot_dimension_numbers<[2], [1], [1], [2], [0, 0, 0, 1, 1, 2], [0], [0]>} : vector<8x8x8xf32>, vector<8x8x8xf32>, vector<8x8x8xf32> -> vector<8x8x8xf32>
    "tpu.trace_stop"() : () -> ()
    %44 = tpu.reciprocal %42 {approx = true} : vector<8x8x1xf32> -> vector<8x8x1xf32>
    %45 = vector.broadcast %44 : vector<8x8x1xf32> to vector<8x8x8xf32>
    %46 = arith.mulf %43, %45 : vector<8x8x8xf32>
    %47 = vector.extract_strided_slice %46 {offsets = [0, 0, 0], sizes = [2, 8, 8], strides = [1, 1, 1]} : vector<8x8x8xf32> to vector<2x8x8xf32>
    %48 = vector.shape_cast %47 : vector<2x8x8xf32> to vector<16x8xf32>
    %c0_51 = arith.constant 0 : index
    %c0_52 = arith.constant 0 : index
    %49 = vector.load %arg9[%c0_51, %c0_52] : memref<16x32xf32, #tpu.memory_space<vmem>>, vector<16x8xf32>
    tpu.vector_store %arg9[%c0_51, %c0_52], %48 {strides = array<i32>} : memref<16x32xf32, #tpu.memory_space<vmem>>, vector<16x8xf32>,
    %50 = vector.extract_strided_slice %46 {offsets = [2, 0, 0], sizes = [2, 8, 8], strides = [1, 1, 1]} : vector<8x8x8xf32> to vector<2x8x8xf32>
    %51 = vector.shape_cast %50 : vector<2x8x8xf32> to vector<16x8xf32>
    %c0_53 = arith.constant 0 : index
    %c8 = arith.constant 8 : index
    %52 = vector.load %arg9[%c0_53, %c8] : memref<16x32xf32, #tpu.memory_space<vmem>>, vector<16x8xf32>
    tpu.vector_store %arg9[%c0_53, %c8], %51 {strides = array<i32>} : memref<16x32xf32, #tpu.memory_space<vmem>>, vector<16x8xf32>,
    %53 = vector.extract_strided_slice %46 {offsets = [4, 0, 0], sizes = [2, 8, 8], strides = [1, 1, 1]} : vector<8x8x8xf32> to vector<2x8x8xf32>
    %54 = vector.shape_cast %53 : vector<2x8x8xf32> to vector<16x8xf32>
    %c0_54 = arith.constant 0 : index
    %c16 = arith.constant 16 : index
    %55 = vector.load %arg9[%c0_54, %c16] : memref<16x32xf32, #tpu.memory_space<vmem>>, vector<16x8xf32>
    tpu.vector_store %arg9[%c0_54, %c16], %54 {strides = array<i32>} : memref<16x32xf32, #tpu.memory_space<vmem>>, vector<16x8xf32>,
    %56 = vector.extract_strided_slice %46 {offsets = [6, 0, 0], sizes = [2, 8, 8], strides = [1, 1, 1]} : vector<8x8x8xf32> to vector<2x8x8xf32>
    %57 = vector.shape_cast %56 : vector<2x8x8xf32> to vector<16x8xf32>
    %c0_55 = arith.constant 0 : index
    %c24 = arith.constant 24 : index
    %58 = vector.load %arg9[%c0_55, %c24] : memref<16x32xf32, #tpu.memory_space<vmem>>, vector<16x8xf32>
    tpu.vector_store %arg9[%c0_55, %c24], %57 {strides = array<i32>} : memref<16x32xf32, #tpu.memory_space<vmem>>, vector<16x8xf32>,
    %c0_56 = arith.constant 0 : index
    %c0_57 = arith.constant 0 : index
    %59 = vector.load %arg9[%c0_56, %c0_57] : memref<16x32xf32, #tpu.memory_space<vmem>>, vector<16x32xf32>
    %c0_58 = arith.constant 0 : index
    %c0_59 = arith.constant 0 : index
    %60 = vector.load %arg3[%c0_58, %c0_59] : memref<32x32xf32, #tpu.memory_space<vmem>>, vector<32x32xf32>
    %cst_60 = arith.constant dense<0.000000e+00> : vector<16x32xf32>
    %61 = tpu.matmul %59, %60, %cst_60 {dimension_numbers = #tpu.dot_dimension_numbers<[1], [0], [0], [1], [0, 0, 1, 1], [], []>} : vector<16x32xf32>, vector<32x32xf32>, vector<16x32xf32> -> vector<16x32xf32>
    %c0_61 = arith.constant 0 : index
    %c0_62 = arith.constant 0 : index
    %62 = vector.load %arg4[%c0_61, %c0_62] : memref<1x32xf32, #tpu.memory_space<vmem>>, vector<1x32xf32>
    %63 = vector.broadcast %62 : vector<1x32xf32> to vector<16x32xf32>
    %64 = arith.addf %61, %63 : vector<16x32xf32>
    %65 = vector.shape_cast %64 : vector<16x32xf32> to vector<2x8x32xf32>
    %c0_63 = arith.constant 0 : index
    %c0_64 = arith.constant 0 : index
    %c0_65 = arith.constant 0 : index
    %66 = vector.load %arg5[%c0_63, %c0_64, %c0_65] : memref<2x8x32xf32, #tpu.memory_space<vmem>>, vector<2x8x32xf32>
    tpu.vector_store %arg5[%c0_63, %c0_64, %c0_65], %65 {strides = array<i32>} : memref<2x8x32xf32, #tpu.memory_space<vmem>>, vector<2x8x32xf32>,
    return
  }
  func.func @transform_0(%arg0: i32) -> (i32, i32, i32) {
    %c0_i32 = arith.constant 0 : i32
    %c0_i32_0 = arith.constant 0 : i32
    %c0_i32_1 = arith.constant 0 : i32
    return %arg0, %c0_i32, %c0_i32_0 : i32, i32, i32
  }
  func.func @transform_1(%arg0: i32) -> (i32, i32) {
    %c0_i32 = arith.constant 0 : i32
    %c0_i32_0 = arith.constant 0 : i32
    %c0_i32_1 = arith.constant 0 : i32
    return %c0_i32, %c0_i32_0 : i32, i32
  }
  func.func @transform_2(%arg0: i32) -> (i32, i32) {
    %c0_i32 = arith.constant 0 : i32
    %c0_i32_0 = arith.constant 0 : i32
    %c0_i32_1 = arith.constant 0 : i32
    return %c0_i32, %c0_i32_0 : i32, i32
  }
  func.func @transform_3(%arg0: i32) -> (i32, i32) {
    %c0_i32 = arith.constant 0 : i32
    %c0_i32_0 = arith.constant 0 : i32
    %c0_i32_1 = arith.constant 0 : i32
    return %c0_i32, %c0_i32_0 : i32, i32
  }
  func.func @transform_4(%arg0: i32) -> (i32, i32, i32) {
    %c0_i32 = arith.constant 0 : i32
    %c0_i32_0 = arith.constant 0 : i32
    %c0_i32_1 = arith.constant 0 : i32
    return %arg0, %c0_i32, %c0_i32_0 : i32, i32, i32
  }
}

</mosaic_0001>

<bundles_post_ra>
// kernel: tpu_custom_call.1
= control target key start
LH: loop header
LB: loop body
LE: loop exit
PB: predicated region body
PF: predicated region fallthrough
CT: control target
= control target key end

     0   :  { %9 = vsyncpa [#allocation7], 0  ;;  %s2243_s0 = inlined_call_operand.hbm [shape: f32[2,8,32], index: 0, kind: input, shape index: {}]   ;;  %s2244_s1 = inlined_call_operand.hbm [shape: f32[32,96], index: 1, kind: input, shape index: {}]   ;;  %s2245_s2 = inlined_call_operand.hbm [shape: f32[32,32], index: 2, kind: input, shape index: {}]   ;;  %s2246_s3 = inlined_call_operand.vmem [shape: f32[1,32], index: 3, kind: input, shape index: {}]   ;;  %s2247_s4 = inlined_call_operand.hbm [shape: f32[2,8,32], index: 4, kind: output, shape index: {}]  }
   0x1   :  { %10 = vsyncpa [#allocation10], 0 }
   0x2   :  { %11 = vsyncpa [#allocation8], 0  ;;  %s2020_s15 = smov [#allocation9]   ;;  %s2021_s17 = smov [#allocation6]  }
   0x3   :  { %s29_s16 = sshll.u32 %s2020_s15, 4  ;;  %s17_s18 = sshll.u32 %s2021_s17, 4  ;;  %s30_s16 = int_to_ptr.vmem [resolvable:$true] %s29_s16  ;;  %s18_s18 = int_to_ptr.vmem [resolvable:$true] %s17_s18 }
   0x4   :  { %s1942_s19 = scalar_lea.vmem %s30_s16, 512  ;;  %p1947_p1 = scmp.lt.s32.totalorder %s30_s16, %s30_s16 }
   0x5   :  { %p1943_p0 = scmp.ne.s32.totalorder %s30_s16, %s1942_s19  ;;  %p1948_p2 = scmp.lt.s32.totalorder %s1942_s19, %s1942_s19 }
   0x7   :  { %p1949_p3 = por %p1948_p2, %p1947_p1 }
   0x9   :  { %p1950_p4 = pnand %p1949_p3, %p1943_p0 }
   0xb   :  { %1953 = shalt.err (!%p1950_p4)
}
   0xc   :  { %s2022_s20 = smov 128   ;;  %s2023_s21 = smov 8  }
   0xd   :  { %35 = dma.hbm_to_vmem [thread:$0]  %s2244_s1, 512, %s30_s16, [#allocation10], %s2022_s20, %s2022_s20, %s2023_s21  }
   0xe   :  { %s1962_s24 = scalar_lea.vmem %s18_s18, 256  ;;  %p1967_p6 = scmp.lt.s32.totalorder %s18_s18, %s18_s18 }
   0xf   :  { %p1963_p5 = scmp.ne.s32.totalorder %s18_s18, %s1962_s24  ;;  %p1968_p7 = scmp.lt.s32.totalorder %s1962_s24, %s1962_s24 }
  0x11   :  { %p1969_p8 = por %p1968_p7, %p1967_p6 }
  0x13   :  { %p1970_p9 = pnand %p1969_p8, %p1963_p5 }
  0x15   :  { %1973 = shalt.err (!%p1970_p9)
}
  0x16   :  { %23 = dma.hbm_to_vmem [thread:$0]  %s2243_s0, 256, %s18_s18, [#allocation7], %s2022_s20, %s2022_s20, %s2023_s21  }
  0x17   :  { %s2024_s27 = smov [#allocation11]  }
  0x18   :  { %s41_s28 = sshll.u32 %s2024_s27, 4  ;;  %s42_s28 = int_to_ptr.vmem [resolvable:$true] %s41_s28 }
  0x19   :  { %s1982_s29 = scalar_lea.vmem %s42_s28, 512  ;;  %p1987_p11 = scmp.lt.s32.totalorder %s42_s28, %s42_s28 }
  0x1a   :  { %p1983_p10 = scmp.ne.s32.totalorder %s42_s28, %s1982_s29  ;;  %p1988_p12 = scmp.lt.s32.totalorder %s1982_s29, %s1982_s29 }
  0x1c   :  { %p1989_p13 = por %p1988_p12, %p1987_p11 }
  0x1e   :  { %p1990_p0 = pnand %p1989_p13, %p1983_p10 }
  0x20   :  { %1993 = shalt.err (!%p1990_p0)
}
  0x21   :  { %47 = dma.hbm_to_vmem [thread:$0]  %s2245_s2, 512, %s42_s28, [#allocation10], %s2022_s20, %s2022_s20, %s2023_s21  }
  0x22   :  { %2014 = dma.done.wait [#allocation7], 256  }
  0x23   :  { %2015 = vsyncadd [#allocation7], 4294967040 }
  0x24   :  { %2016 = dma.done.wait [#allocation10], 1024  }
  0x25   :  { %2017 = vsyncadd [#allocation10], 4294966272  ;;  %vm65_vm0 = vcmask 261120   ;;  %v64_v0 = vld [vmem:[#allocation9 + $0x18] sm:$0xff]  ;;  %v63_v1 = vld [vmem:[#allocation9 + $0x10] sm:$0xff]  ;;  %v2025_v6 = vmov 0.0  }
  0x26   :  { %1779 = vmatprep.subr.mxu0 %v64_v0  ;;  %v59_v2 = vld [vmem:[#allocation6] sm:$0xff]  ;;  %v62_v3 = vld [vmem:[#allocation9 + $0x8] sm:$0xff]  ;;  %v61_v4 = vld [vmem:[#allocation9] sm:$0xff]  ;;  %1790 = vmatprep.subr.mxu1 %v2025_v6  ;;  %vm149_vm1 = vcmask 64512   ;;  %vm2026_vm2 = vmmov 0   ;;  %s2027_s0 = smov 80  }
  0x27   :  { %1780 = vmatpush3.msra.mxu0 %v64_v0  ;;  %1787 = vmatprep.mubr.msk.f32.mxu0 %vm65_vm0, %v59_v2  ;;  %v60_v5 = vld [vmem:[#allocation6 + $0x8] sm:$0xff]  ;;  %s2028_s2 = smov 96   ;;  %s2029_s5 = smov 88   ;;  %vm1567_vm3 = vcmask 130112   ;;  %vm1578_vm4 = vcmask 195712   ;;  %vm1589_vm5 = vcmask 261312  }
  0x28   :  { %1781 = vmatprep.subr.mxu0 %v63_v1  ;;  %1792 = vmatprep.mubr.msk.f32.mxu1 %vm2026_vm2, %v2025_v6  ;;  %s2030_s6 = smov 120   ;;  %s2031_s7 = smov 112  }
  0x29   :  { %1782 = vmatpush3.msra.mxu0 %v63_v1  ;;  %s2032_s8 = smov 72   ;;  %s2033_s9 = smov 104  }
  0x2a   :  { %1783 = vmatprep.subr.mxu0 %v62_v3  ;;  %s2034_s10 = smov 64   ;;  %s2035_s11 = smov 56  }
  0x2b   :  { %1784 = vmatpush3.msra.mxu0 %v62_v3  ;;  %s2036_s12 = smov 48   ;;  %s2037_s13 = smov 40  }
  0x2c   :  { %1785 = vmatprep.subr.mxu0 %v61_v4  ;;  %s2038_s14 = smov 16   ;;  %s2039_s15 = smov 24  }
  0x2d   :  { %1786 = vmatpush3.msra.mxu0 %v61_v4  ;;  %s2040_s18 = smov [#allocation12]  }
  0x2e   :  { %1788 = vmatmul.mubr.msk.f32.vlgmr.msra.gmra.mxu0 %vm65_vm0, %v60_v5  ;;  %1810 = vmatprep.subr.mxu0 %v2025_v6  ;;  %s1693_s19 = sshll.u32 %s2040_s18, 4  ;;  %s1694_s19 = int_to_ptr.vmem [resolvable:$true] %s1693_s19 }
  0x2f   :  { %1812 = vmatprep.mubr.msk.f32.mxu0 %vm2026_vm2, %v2025_v6  ;;  %s1994_s22 = scalar_lea.vmem %s1694_s19, 256  ;;  %p1999_p2 = scmp.lt.s32.totalorder %s1694_s19, %s1694_s19 }
  0x30   :  { %p1995_p1 = scmp.ne.s32.totalorder %s1694_s19, %s1994_s22  ;;  %p2000_p3 = scmp.lt.s32.totalorder %s1994_s22, %s1994_s22 }
  0x32   :  { %p2001_p4 = por %p2000_p3, %p1999_p2 }
  0x34   :  { %p2002_p5 = pnand %p2001_p4, %p1995_p1 }
  0xee   :  { %v2088_v7 = vpop.f32.mrf.mxu0 }
  0xef   :  { %210 = vrot.lane.b32.xlu1 %v2088_v7, %s2027_s0  ;;  %v148_v8 = vmul.f32 0.35355338, %v2088_v7 }
  0xf0   :  { %v2096_v9 = vpop.f32.mrf.mxu0 }
  0xf1   :  { %154 = vrot.lane.b32.xlu0 %v2096_v9, %s2028_s2  ;;  %151 = vst.msk [vmem:[#allocation2 + $0x8] sm:$0xff] %vm149_vm1, %v148_v8  ;;  %v147_v10 = vmul.f32 0.35355338, %v2096_v9 }
  0xf3   :  { %181 = vrot.lane.b32.xlu1 %v2096_v9, %s2029_s5  ;;  %150 = vst.msk [vmem:[#allocation2] sm:$0xff] %vm149_vm1, %v147_v10 }
  0xf5   :  { %156 = vrot.lane.b32.xlu0 %v2088_v7, %s2028_s2 }
  0xf7   :  { %174 = vrot.lane.b32.xlu1 %v148_v8, %s2030_s6 }
  0xf8   :  { %v254_v23 = vld [vmem:[#allocation2 + $0x8] sm:$0xff] }
  0xf9   :  { %183 = vrot.lane.b32.xlu0 %v2088_v7, %s2029_s5 }
  0xfa   :  { %v253_v19 = vld [vmem:[#allocation2] sm:$0xff] }
  0xfb   :  { %172 = vrot.lane.b32.xlu1 %v147_v10, %s2030_s6 }
  0xfd   :  { %208 = vrot.lane.b32.xlu0 %v2096_v9, %s2027_s0 }
  0xff   :  { %201 = vrot.lane.b32.xlu1 %v148_v8, %s2031_s7 }
 0x101   :  { %235 = vrot.lane.b32.xlu0 %v2096_v9, %s2032_s8 }
 0x103   :  { %237 = vrot.lane.b32.xlu1 %v2088_v7, %s2032_s8 }
 0x105   :  { %199 = vrot.lane.b32.xlu0 %v147_v10, %s2031_s7 }
 0x107   :  { %228 = vrot.lane.b32.xlu1 %v148_v8, %s2033_s9 }
 0x109   :  { %226 = vrot.lane.b32.xlu0 %v147_v10, %s2033_s9 }
 0x10b   :  { %162 = vrot.lane.b32.xlu1 %v2096_v9, %s2034_s10 }
 0x10d   :  { %164 = vrot.lane.b32.xlu0 %v2088_v7, %s2034_s10 }
 0x10f   :  { %190 = vrot.lane.b32.xlu1 %v2096_v9, %s2035_s11 }
 0x111   :  { %217 = vrot.lane.b32.xlu0 %v2096_v9, %s2036_s12 }
 0x113   :  { %192 = vrot.lane.b32.xlu1 %v2088_v7, %s2035_s11 }
 0x117   :  { %219 = vrot.lane.b32.xlu1 %v2088_v7, %s2036_s12 }
 0x161   :  { %v211_v11 = vpop.permute.xlu1 %210 }
 0x162   :  { %216 = vst.msk [vmem:[#allocation3 + $0x28] sm:$0xff] %vm149_vm1, %v211_v11 }
 0x163   :  { %v155_v12 = vpop.permute.xlu0 %154 }
 0x164   :  { %160 = vst.msk [vmem:[#allocation3] sm:$0xff] %vm149_vm1, %v155_v12 }
 0x165   :  { %v182_v13 = vpop.permute.xlu1 %181 }
 0x166   :  { %188 = vst.msk [vmem:[#allocation3 + $0x10] sm:$0xff] %vm149_vm1, %v182_v13 }
 0x167   :  { %v157_v14 = vpop.permute.xlu0 %156 }
 0x168   :  { %161 = vst.msk [vmem:[#allocation3 + $0x8] sm:$0xff] %vm149_vm1, %v157_v14 }
 0x169   :  { %v175_v15 = vpop.permute.xlu1 %174  ;;  %v266_v34 = vld [vmem:[#allocation3 + $0x28] sm:$0xff] }
 0x16a   :  { %180 = vst.msk [vmem:[#allocation2 + $0x18] sm:$0xff] %vm149_vm1, %v175_v15 }
 0x16b   :  { %v184_v16 = vpop.permute.xlu0 %183  ;;  %v261_v17 = vld [vmem:[#allocation3] sm:$0xff] }
 0x16c   :  { %189 = vst.msk [vmem:[#allocation3 + $0x18] sm:$0xff] %vm149_vm1, %v184_v16  ;;  %1791 = vmatpush3.xpose.msk.msra.mxu1 %vm149_vm1, %v261_v17 }
 0x16d   :  { %v173_v18 = vpop.permute.xlu1 %172  ;;  %1795 = vmatprep.subr.mxu1 %v2025_v6  ;;  %v263_v25 = vld [vmem:[#allocation3 + $0x10] sm:$0xff] }
 0x16e   :  { %179 = vst.msk [vmem:[#allocation2 + $0x10] sm:$0xff] %vm149_vm1, %v173_v18 }
 0x16f   :  { %v209_v20 = vpop.permute.xlu0 %208  ;;  %1793 = vmatmul.mubr.msk.f32.vlgmr.msra.gmra.mxu1 %vm149_vm1, %v253_v19  ;;  %v262_v21 = vld [vmem:[#allocation3 + $0x8] sm:$0xff] }
 0x170   :  { %215 = vst.msk [vmem:[#allocation3 + $0x20] sm:$0xff] %vm149_vm1, %v209_v20  ;;  %1796 = vmatpush3.xpose.msk.msra.mxu1 %vm149_vm1, %v262_v21  ;;  %1797 = vmatprep.mubr.msk.f32.mxu1 %vm2026_vm2, %v2025_v6 }
 0x171   :  { %v202_v22 = vpop.permute.xlu1 %201  ;;  %1800 = vmatprep.subr.mxu1 %v2025_v6  ;;  %v256_v32 = vld [vmem:[#allocation2 + $0x18] sm:$0xff] }
 0x172   :  { %207 = vst.msk [vmem:[#allocation2 + $0x28] sm:$0xff] %vm149_vm1, %v202_v22 }
 0x173   :  { %v236_v24 = vpop.permute.xlu0 %235  ;;  %1798 = vmatmul.mubr.msk.f32.vlgmr.msra.gmra.mxu1 %vm149_vm1, %v254_v23  ;;  %v264_v29 = vld [vmem:[#allocation3 + $0x18] sm:$0xff] }
 0x174   :  { %242 = vst.msk [vmem:[#allocation3 + $0x30] sm:$0xff] %vm149_vm1, %v236_v24  ;;  %1801 = vmatpush3.xpose.msk.msra.mxu1 %vm149_vm1, %v263_v25  ;;  %1802 = vmatprep.mubr.msk.f32.mxu1 %vm2026_vm2, %v2025_v6 }
 0x175   :  { %v238_v26 = vpop.permute.xlu1 %237  ;;  %v255_v27 = vld [vmem:[#allocation2 + $0x10] sm:$0xff]  ;;  %1805 = vmatprep.subr.mxu1 %v2025_v6 }
 0x176   :  { %243 = vst.msk [vmem:[#allocation3 + $0x38] sm:$0xff] %vm149_vm1, %v238_v26 }
 0x177   :  { %v200_v28 = vpop.permute.xlu0 %199  ;;  %1803 = vmatmul.mubr.msk.f32.vlgmr.msra.gmra.mxu1 %vm149_vm1, %v255_v27  ;;  %v265_v30 = vld [vmem:[#allocation3 + $0x20] sm:$0xff] }
 0x178   :  { %206 = vst.msk [vmem:[#allocation2 + $0x20] sm:$0xff] %vm149_vm1, %v200_v28  ;;  %1806 = vmatpush3.xpose.msk.msra.mxu1 %vm149_vm1, %v264_v29  ;;  %1811 = vmatpush3.xpose.msk.msra.mxu0 %vm149_vm1, %v265_v30 }
 0x179   :  { %v229_v31 = vpop.permute.xlu1 %228  ;;  %1807 = vmatprep.mubr.msk.f32.mxu1 %vm2026_vm2, %v2025_v6  ;;  %1815 = vmatprep.subr.mxu1 %v2025_v6  ;;  %v258_v36 = vld [vmem:[#allocation2 + $0x28] sm:$0xff] }
 0x17a   :  { %234 = vst.msk [vmem:[#allocation2 + $0x38] sm:$0xff] %vm149_vm1, %v229_v31  ;;  %1820 = vmatprep.subr.mxu0 %v2025_v6 }
 0x17b   :  { %v227_v33 = vpop.permute.xlu0 %226  ;;  %1808 = vmatmul.mubr.msk.f32.vlgmr.msra.gmra.mxu1 %vm149_vm1, %v256_v32  ;;  %v267_v40 = vld [vmem:[#allocation3 + $0x30] sm:$0xff] }
 0x17c   :  { %233 = vst.msk [vmem:[#allocation2 + $0x30] sm:$0xff] %vm149_vm1, %v227_v33  ;;  %1816 = vmatpush3.xpose.msk.msra.mxu1 %vm149_vm1, %v266_v34  ;;  %1817 = vmatprep.mubr.msk.f32.mxu1 %vm2026_vm2, %v2025_v6 }
 0x17d   :  { %v163_v35 = vpop.permute.xlu1 %162  ;;  %1825 = vmatprep.subr.mxu1 %v2025_v6  ;;  %v268_v39 = vld [vmem:[#allocation3 + $0x38] sm:$0xff] }
 0x17e   :  { %168 = vst.msk [vmem:[#allocation4] sm:$0xff] %vm149_vm1, %v163_v35 }
 0x17f   :  { %v165_v37 = vpop.permute.xlu0 %164  ;;  %1818 = vmatmul.mubr.msk.f32.vlgmr.msra.gmra.mxu1 %vm149_vm1, %v258_v36  ;;  %v257_v38 = vld [vmem:[#allocation2 + $0x20] sm:$0xff] }
 0x180   :  { %169 = vst.msk [vmem:[#allocation4 + $0x8] sm:$0xff] %vm149_vm1, %v165_v37  ;;  %1813 = vmatmul.mubr.msk.f32.vlgmr.msra.gmra.mxu0 %vm149_vm1, %v257_v38  ;;  %1826 = vmatpush3.xpose.msk.msra.mxu1 %vm149_vm1, %v268_v39 }
 0x181   :  { %1821 = vmatpush3.xpose.msk.msra.mxu0 %vm149_vm1, %v267_v40  ;;  %v191_v41 = vpop.permute.xlu1 %190  ;;  %1827 = vmatprep.mubr.msk.f32.mxu1 %vm2026_vm2, %v2025_v6  ;;  %v260_v42 = vld [vmem:[#allocation2 + $0x38] sm:$0xff] }
 0x182   :  { %197 = vst.msk [vmem:[#allocation4 + $0x10] sm:$0xff] %vm149_vm1, %v191_v41  ;;  %1822 = vmatprep.mubr.msk.f32.mxu0 %vm2026_vm2, %v2025_v6  ;;  %1830 = vmatprep.subr.mxu0 %v2025_v6 }
 0x183   :  { %v218_v43 = vpop.permute.xlu0 %217  ;;  %1828 = vmatmul.mubr.msk.f32.vlgmr.msra.gmra.mxu1 %vm149_vm1, %v260_v42  ;;  %v259_v44 = vld [vmem:[#allocation2 + $0x30] sm:$0xff]  ;;  %1835 = vmatprep.subr.mxu1 %v2025_v6 }
 0x184   :  { %224 = vst.msk [vmem:[#allocation4 + $0x20] sm:$0xff] %vm149_vm1, %v218_v43  ;;  %1823 = vmatmul.mubr.msk.f32.vlgmr.msra.gmra.mxu0 %vm149_vm1, %v259_v44  ;;  %1837 = vmatprep.mubr.msk.f32.mxu1 %vm2026_vm2, %v2025_v6 }
 0x185   :  { %v193_v45 = vpop.permute.xlu1 %192  ;;  %v269_v46 = vld [vmem:[#allocation4] sm:$0xff]  ;;  %1832 = vmatprep.mubr.msk.f32.mxu0 %vm2026_vm2, %v2025_v6 }
 0x186   :  { %198 = vst.msk [vmem:[#allocation4 + $0x18] sm:$0xff] %vm149_vm1, %v193_v45  ;;  %1831 = vmatpush3.msra.mxu0 %v269_v46 }
 0x187   :  { %v270_v47 = vld [vmem:[#allocation4 + $0x8] sm:$0xff]  ;;  %1840 = vmatprep.subr.mxu0 %v2025_v6 }
 0x188   :  { %1836 = vmatpush3.msra.mxu1 %v270_v47 }
 0x189   :  { %v220_v48 = vpop.permute.xlu1 %219  ;;  %1845 = vmatprep.subr.mxu1 %v2025_v6 }
 0x18a   :  { %225 = vst.msk [vmem:[#allocation4 + $0x28] sm:$0xff] %vm149_vm1, %v220_v48 }
 0x18b   :  { %v273_v36 = vld [vmem:[#allocation4 + $0x20] sm:$0xff] }
 0x18d   :  { %v272_v46 = vld [vmem:[#allocation4 + $0x18] sm:$0xff] }
 0x22f   :  { %v349_v49 = vpop.f32.mrf.mxu1 }
 0x230   :  { %v885_v50 = vsel %vm149_vm1, %v349_v49, -inf }
 0x231   :  { %886 = vmax.xlane.f32.xlu0 %v885_v50  ;;  %v1794_v51 = vpop.f32.mrf.mxu1  ;;  %v274_v50 = vld [vmem:[#allocation4 + $0x28] sm:$0xff] }
 0x233   :  { %v425_v52 = vpop.f32.mrf.mxu1 }
 0x234   :  { %v888_v8 = vsel %vm149_vm1, %v425_v52, -inf }
 0x235   :  { %v1799_v53 = vpop.f32.mrf.mxu1 }
 0x237   :  { %v501_v54 = vpop.f32.mrf.mxu1 }
 0x238   :  { %v891_v55 = vsel %vm149_vm1, %v501_v54, -inf }
 0x239   :  { %892 = vmax.xlane.f32.xlu0 %v891_v55  ;;  %v1804_v56 = vpop.f32.mrf.mxu1 }
 0x23b   :  { %v577_v57 = vpop.f32.mrf.mxu1 }
 0x23c   :  { %v894_v58 = vsel %vm149_vm1, %v577_v57, -inf }
 0x23d   :  { %895 = vmax.xlane.f32.xlu0 %v894_v58  ;;  %v1809_v59 = vpop.f32.mrf.mxu1 }
 0x23f   :  { %v729_v60 = vpop.f32.mrf.mxu1 }
 0x240   :  { %v653_v61 = vpop.f32.mrf.mxu0  ;;  %v900_v62 = vsel %vm149_vm1, %v729_v60, -inf }
 0x241   :  { %901 = vmax.xlane.f32.xlu0 %v900_v62  ;;  %v1819_v63 = vpop.f32.mrf.mxu1  ;;  %v897_v0 = vsel %vm149_vm1, %v653_v61, -inf }
 0x242   :  { %v1814_v1 = vpop.f32.mrf.mxu0  ;;  %898 = vmax.xlane.f32.xlu1 %v897_v0 }
 0x243   :  { %v881_v2 = vpop.f32.mrf.mxu1 }
 0x244   :  { %v805_v3 = vpop.f32.mrf.mxu0  ;;  %v906_v4 = vsel %vm149_vm1, %v881_v2, -inf }
 0x245   :  { %907 = vmax.xlane.f32.xlu0 %v906_v4  ;;  %v1829_v5 = vpop.f32.mrf.mxu1  ;;  %v903_v11 = vsel %vm149_vm1, %v805_v3, -inf }
 0x246   :  { %v1824_v10 = vpop.f32.mrf.mxu0  ;;  %889 = vmax.xlane.f32.xlu1 %v888_v8 }
 0x24a   :  { %904 = vmax.xlane.f32.xlu1 %v903_v11 }
 0x25b   :  { %246 = vrot.lane.b32.xlu1 %v2088_v7, %s2037_s13  ;;  %244 = vrot.lane.b32.xlu0 %v2096_v9, %s2037_s13  ;;  %v271_v7 = vld [vmem:[#allocation4 + $0x10] sm:$0xff] }
 0x2ba   :  { %v887_v12 = vpop.xlane.xlu0 %886 }
 0x2bb   :  { %v909_v13 = vsub.f32 %v349_v49, %v887_v12 }
 0x2bd   :  { %v917_v14 = vmul.f32 1.442695, %v909_v13 }
 0x2bf   :  { %1902 = vpow2.f32 %v917_v14 }
 0x2c2   :  { %v893_v15 = vpop.xlane.xlu0 %892 }
 0x2c3   :  { %v911_v16 = vsub.f32 %v501_v54, %v893_v15 }
 0x2c5   :  { %v921_v17 = vmul.f32 1.442695, %v911_v16 }
 0x2c6   :  { %v896_v18 = vpop.xlane.xlu0 %895 }
 0x2c7   :  { %1904 = vpow2.f32 %v921_v17  ;;  %v912_v19 = vsub.f32 %v577_v57, %v896_v18 }
 0x2c9   :  { %v923_v20 = vmul.f32 1.442695, %v912_v19 }
 0x2ca   :  { %v902_v21 = vpop.xlane.xlu0 %901 }
 0x2cb   :  { %1906 = vpow2.f32 %v923_v20  ;;  %v899_v22 = vpop.xlane.xlu1 %898  ;;  %v914_v26 = vsub.f32 %v729_v60, %v902_v21  ;;  %v1597_v20 = vld [vmem:[#allocation11 + $0x18] sm:$0xff]  ;;  %v1596_v21 = vld [vmem:[#allocation11 + $0x10] sm:$0xff] }
 0x2cc   :  { %v2186_v23 = vpop.eup %1902  ;;  %v913_v24 = vsub.f32 %v653_v61, %v899_v22 }
 0x2cd   :  { %1833 = vmatmul.mubr.msk.f32.vlgmr.msra.gmra.mxu0 %vm149_vm1, %v2186_v23  ;;  %v927_v31 = vmul.f32 1.442695, %v914_v26  ;;  %v933_v55 = vsel %vm149_vm1, %v2186_v23, 0.0 }
 0x2ce   :  { %v925_v9 = vmul.f32 1.442695, %v913_v24  ;;  %1841 = vmatpush3.msra.mxu0 %v271_v7  ;;  %v908_v25 = vpop.xlane.xlu0 %907  ;;  %1842 = vmatprep.mubr.msk.f32.mxu0 %vm2026_vm2, %v2025_v6  ;;  %v1595_v7 = vld [vmem:[#allocation11 + $0x8] sm:$0xff] }
 0x2cf   :  { %v890_v27 = vpop.xlane.xlu1 %889  ;;  %1850 = vmatprep.subr.mxu0 %v2025_v6  ;;  %v916_v32 = vsub.f32 %v881_v2, %v908_v25 }
 0x2d0   :  { %1908 = vpow2.f32 %v925_v9  ;;  %v910_v28 = vsub.f32 %v425_v52, %v890_v27  ;;  %v1594_v27 = vld [vmem:[#allocation11] sm:$0xff] }
 0x2d1   :  { %v931_v38 = vmul.f32 1.442695, %v916_v32 }
 0x2d2   :  { %v919_v29 = vmul.f32 1.442695, %v910_v28  ;;  %v245_v30 = vpop.permute.xlu0 %244 }
 0x2d3   :  { %251 = vst.msk [vmem:[#allocation4 + $0x30] sm:$0xff] %vm149_vm1, %v245_v30  ;;  %v905_v33 = vpop.xlane.xlu1 %904 }
 0x2d4   :  { %v1905_v34 = vpop.eup %1904  ;;  %1910 = vpow2.f32 %v919_v29  ;;  %v915_v35 = vsub.f32 %v805_v3, %v905_v33 }
 0x2d5   :  { %1843 = vmatmul.mubr.msk.f32.vlgmr.msra.gmra.mxu0 %vm149_vm1, %v1905_v34  ;;  %1912 = vpow2.f32 %v927_v31  ;;  %v939_v47 = vsel %vm149_vm1, %v1905_v34, 0.0 }
 0x2d6   :  { %v929_v37 = vmul.f32 1.442695, %v915_v35  ;;  %1851 = vmatpush3.msra.mxu0 %v273_v36  ;;  %1852 = vmatprep.mubr.msk.f32.mxu0 %vm2026_vm2, %v2025_v6 }
 0x2d7   :  { %v247_v39 = vpop.permute.xlu1 %246  ;;  %1860 = vmatprep.subr.mxu0 %v2025_v6 }
 0x2d8   :  { %v1907_v40 = vpop.eup %1906  ;;  %1914 = vpow2.f32 %v929_v37  ;;  %252 = vst.msk [vmem:[#allocation4 + $0x38] sm:$0xff] %vm149_vm1, %v247_v39 }
 0x2d9   :  { %v942_v41 = vsel %vm149_vm1, %v1907_v40, 0.0  ;;  %1916 = vpow2.f32 %v931_v38 }
 0x2da   :  { %943 = vadd.xlane.f32.xlu1 %v942_v41  ;;  %v275_v43 = vld [vmem:[#allocation4 + $0x30] sm:$0xff] }
 0x2dd   :  { %v1909_v42 = vpop.eup %1908 }
 0x2de   :  { %1853 = vmatmul.mubr.msk.f32.vlgmr.msra.gmra.mxu0 %vm149_vm1, %v1909_v42  ;;  %v945_v44 = vsel %vm149_vm1, %v1909_v42, 0.0 }
 0x2df   :  { %1861 = vmatpush3.msra.mxu0 %v275_v43  ;;  %946 = vadd.xlane.f32.xlu0 %v945_v44  ;;  %v276_v54 = vld [vmem:[#allocation4 + $0x38] sm:$0xff] }
 0x2e0   :  { %1862 = vmatprep.mubr.msk.f32.mxu0 %vm2026_vm2, %v2025_v6  ;;  %1870 = vmatprep.subr.mxu0 %v1597_v20 }
 0x2e1   :  { %v1911_v45 = vpop.eup %1910 }
 0x2e2   :  { %1838 = vmatmul.mubr.msk.f32.vlgmr.msra.gmra.mxu1 %vm149_vm1, %v1911_v45  ;;  %v1913_v48 = vpop.eup %1912  ;;  %v936_v57 = vsel %vm149_vm1, %v1911_v45, 0.0 }
 0x2e3   :  { %1846 = vmatpush3.msra.mxu1 %v272_v46  ;;  %940 = vadd.xlane.f32.xlu0 %v939_v47  ;;  %v948_v52 = vsel %vm149_vm1, %v1913_v48, 0.0  ;;  %v1732_v46 = vld [vmem:[%s2246_s3] ss:$0 sm:$0xff] }
 0x2e4   :  { %1847 = vmatprep.mubr.msk.f32.mxu1 %vm2026_vm2, %v2025_v6  ;;  %1855 = vmatprep.subr.mxu1 %v2025_v6 }
 0x2e5   :  { %v1915_v49 = vpop.eup %1914 }
 0x2e6   :  { %1848 = vmatmul.mubr.msk.f32.vlgmr.msra.gmra.mxu1 %vm149_vm1, %v1907_v40  ;;  %1863 = vmatmul.mubr.msk.f32.vlgmr.msra.gmra.mxu0 %vm149_vm1, %v1915_v49  ;;  %v951_v51 = vsel %vm149_vm1, %v1915_v49, 0.0  ;;  %v1917_v53 = vpop.eup %1916 }
 0x2e7   :  { %1856 = vmatpush3.msra.mxu1 %v274_v50  ;;  %952 = vadd.xlane.f32.xlu1 %v951_v51  ;;  %v954_v56 = vsel %vm149_vm1, %v1917_v53, 0.0 }
 0x2e8   :  { %949 = vadd.xlane.f32.xlu0 %v948_v52  ;;  %1857 = vmatprep.mubr.msk.f32.mxu1 %vm2026_vm2, %v2025_v6 }
 0x2e9   :  { %1865 = vmatprep.subr.mxu1 %v2025_v6  ;;  %1871 = vmatpush3.msra.mxu0 %v1597_v20 }
 0x2ea   :  { %1858 = vmatmul.mubr.msk.f32.vlgmr.msra.gmra.mxu1 %vm149_vm1, %v1913_v48  ;;  %1872 = vmatprep.subr.mxu0 %v1596_v21 }
 0x2eb   :  { %1866 = vmatpush3.msra.mxu1 %v276_v54  ;;  %934 = vadd.xlane.f32.xlu1 %v933_v55 }
 0x2ec   :  { %955 = vadd.xlane.f32.xlu0 %v954_v56  ;;  %1867 = vmatprep.mubr.msk.f32.mxu1 %vm2026_vm2, %v2025_v6 }
 0x2ed   :  { %1873 = vmatpush3.msra.mxu0 %v1596_v21 }
 0x2ee   :  { %1868 = vmatmul.mubr.msk.f32.vlgmr.msra.gmra.mxu1 %vm149_vm1, %v1917_v53  ;;  %1874 = vmatprep.subr.mxu0 %v1595_v7 }
 0x2ef   :  { %1875 = vmatpush3.msra.mxu0 %v1595_v7 }
 0x2f0   :  { %937 = vadd.xlane.f32.xlu0 %v936_v57  ;;  %1876 = vmatprep.subr.mxu0 %v1594_v27 }
 0x2f1   :  { %1877 = vmatpush3.msra.mxu0 %v1594_v27 }
 0x363   :  { %v944_v58 = vpop.xlane.xlu1 %943 }
 0x368   :  { %v947_v60 = vpop.xlane.xlu0 %946 }
 0x36c   :  { %v941_v62 = vpop.xlane.xlu0 %940 }
 0x370   :  { %v953_v59 = vpop.xlane.xlu1 %952 }
 0x371   :  { %v950_v63 = vpop.xlane.xlu0 %949 }
 0x374   :  { %v935_v61 = vpop.xlane.xlu1 %934 }
 0x375   :  { %1918 = vrcp.f32 %v935_v61  ;;  %v956_v0 = vpop.xlane.xlu0 %955 }
 0x376   :  { %1920 = vrcp.f32 %v941_v62 }
 0x377   :  { %1922 = vrcp.f32 %v947_v60 }
 0x379   :  { %v938_v6 = vpop.xlane.xlu0 %937 }
 0x37a   :  { %1924 = vrcp.f32 %v938_v6 }
 0x37b   :  { %1926 = vrcp.f32 %v944_v58 }
 0x37c   :  { %1928 = vrcp.f32 %v953_v59 }
 0x37d   :  { %1930 = vrcp.f32 %v950_v63 }
 0x37e   :  { %1932 = vrcp.f32 %v956_v0 }
 0x382   :  { %v1919_v1 = vpop.eup %1918 }
 0x383   :  { %v1921_v5 = vpop.eup %1920 }
 0x384   :  { %v1923_v12 = vpop.eup %1922 }
 0x387   :  { %v1925_v16 = vpop.eup %1924 }
 0x388   :  { %v1927_v22 = vpop.eup %1926 }
 0x389   :  { %v1929_v28 = vpop.eup %1928 }
 0x38a   :  { %v1931_v29 = vpop.eup %1930 }
 0x38b   :  { %v1933_v34 = vpop.eup %1932 }
 0x38d   :  { %v1026_v2 = vpop.f32.mrf.mxu0 }
 0x38e   :  { %v1549_v3 = vmul.f32 %v1919_v1, %v1026_v2 }
 0x38f   :  { %v1834_v4 = vpop.f32.mrf.mxu0 }
 0x390   :  { %1557 = vst.msk [vmem:[#allocation5] sm:$0xff] %vm149_vm1, %v1549_v3 }
 0x395   :  { %v1172_v8 = vpop.f32.mrf.mxu0 }
 0x396   :  { %v1551_v10 = vmul.f32 %v1921_v5, %v1172_v8 }
 0x397   :  { %v1844_v11 = vpop.f32.mrf.mxu0 }
 0x398   :  { %1561 = vrot.lane.b32.xlu1 %v1551_v10, %s2023_s21 }
 0x39e   :  { %v1318_v13 = vpop.f32.mrf.mxu0 }
 0x39f   :  { %v1553_v14 = vmul.f32 %v1923_v12, %v1318_v13 }
 0x3a0   :  { %v1854_v15 = vpop.f32.mrf.mxu0 }
 0x3a1   :  { %1572 = vrot.lane.b32.xlu1 %v1553_v14, %s2038_s14 }
 0x3a2   :  { %v1099_v17 = vpop.f32.mrf.mxu1 }
 0x3a3   :  { %v1550_v18 = vmul.f32 %v1925_v16, %v1099_v17 }
 0x3a4   :  { %v1839_v19 = vpop.f32.mrf.mxu1 }
 0x3a5   :  { %1558 = vst.msk [vmem:[#allocation5 + $0x8] sm:$0xff] %vm149_vm1, %v1550_v18 }
 0x3a6   :  { %v1245_v23 = vpop.f32.mrf.mxu1  ;;  %v1464_v24 = vpop.f32.mrf.mxu0 }
 0x3a7   :  { %v1552_v9 = vmul.f32 %v1927_v22, %v1245_v23  ;;  %v1555_v31 = vmul.f32 %v1929_v28, %v1464_v24 }
 0x3a8   :  { %v1849_v25 = vpop.f32.mrf.mxu1  ;;  %v1864_v26 = vpop.f32.mrf.mxu0 }
 0x3a9   :  { %1563 = vrot.lane.b32.xlu0 %v1552_v9, %s2023_s21 }
 0x3aa   :  { %v1391_v30 = vpop.f32.mrf.mxu1 }
 0x3ab   :  { %v1554_v32 = vmul.f32 %v1931_v29, %v1391_v30 }
 0x3ac   :  { %v1859_v33 = vpop.f32.mrf.mxu1 }
 0x3ad   :  { %1583 = vrot.lane.b32.xlu0 %v1555_v31, %s2039_s15  ;;  %1574 = vrot.lane.b32.xlu1 %v1554_v32, %s2038_s14 }
 0x3ae   :  { %v1537_v35 = vpop.f32.mrf.mxu1 }
 0x3af   :  { %v1556_v36 = vmul.f32 %v1933_v34, %v1537_v35 }
 0x3b0   :  { %v1869_v37 = vpop.f32.mrf.mxu1 }
 0x3b1   :  { %1585 = vrot.lane.b32.xlu1 %v1556_v36, %s2039_s15 }
 0x40a   :  { %v1562_v38 = vpop.permute.xlu1 %1561 }
 0x40b   :  { %1568 = vst.msk [vmem:[#allocation5] sm:$0xff] %vm1567_vm3, %v1562_v38 }
 0x413   :  { %v1573_v39 = vpop.permute.xlu1 %1572 }
 0x414   :  { %1579 = vst.msk [vmem:[#allocation5] sm:$0xff] %vm1578_vm4, %v1573_v39 }
 0x41b   :  { %v1564_v40 = vpop.permute.xlu0 %1563 }
 0x41c   :  { %1569 = vst.msk [vmem:[#allocation5 + $0x8] sm:$0xff] %vm1567_vm3, %v1564_v40 }
 0x41f   :  { %v1584_v41 = vpop.permute.xlu0 %1583  ;;  %v1575_v42 = vpop.permute.xlu1 %1574 }
 0x420   :  { %1590 = vst.msk [vmem:[#allocation5] sm:$0xff] %vm1589_vm5, %v1584_v41 }
 0x421   :  { %1580 = vst.msk [vmem:[#allocation5 + $0x8] sm:$0xff] %vm1578_vm4, %v1575_v42 }
 0x423   :  { %v1586_v43 = vpop.permute.xlu1 %1585 }
 0x424   :  { %1591 = vst.msk [vmem:[#allocation5 + $0x8] sm:$0xff] %vm1589_vm5, %v1586_v43 }
 0x427   :  { %v1592_v44 = vld [vmem:[#allocation5] sm:$0xff] }
 0x428   :  { %1878 = vmatprep.mubr.msk.f32.mxu0 %vm65_vm0, %v1592_v44 }
 0x42b   :  { %v1593_v45 = vld [vmem:[#allocation5 + $0x8] sm:$0xff] }
 0x42c   :  { %1879 = vmatmul.mubr.msk.f32.vlgmr.msra.gmra.mxu0 %vm65_vm0, %v1593_v45 }
 0x4ec   :  { %v1880_v47 = vpop.f32.mrf.mxu0 }
 0x4ed   :  { %v1683_v48 = vadd.f32 %v1880_v47, %v1732_v46 }
 0x4ee   :  { %v1677_v49 = vpop.f32.mrf.mxu0 }
 0x4ef   :  { %1687 = vst.msk [vmem:[#allocation12 + $0x8] sm:$0xff] %vm65_vm0, %v1683_v48  ;;  %v1678_v50 = vadd.f32 %v1732_v46, %v1677_v49 }
 0x4f1   :  { %1686 = vst.msk [vmem:[#allocation12] sm:$0xff] %vm65_vm0, %v1678_v50 }
 0x4f2   :  { %2005 = shalt.err (!%p2002_p5)
}
 0x4f3   :  { %1699 = dma.vmem_to_hbm [thread:$0]  %s1694_s19, 256, %s2247_s4, [#allocation8], %s2022_s20, %s2022_s20, %s2023_s21  }
 0x4f4   :  { %2018 = dma.done.wait [#allocation8], 256  }
 0x4f5   :  { %2019 = vsyncadd [#allocation8], 4294967040 }
 0x4f6   :  { %1703 = vsyncpa [#allocation7], 1 }
 0x4f7   :  { %1704 = vsyncpa [#allocation10], 1 }
 0x4f8   :  { %1705 = vsyncpa [#allocation8], 1 }

// kernel: tpu_custom_call.1
= control target key start
LH: loop header
LB: loop body
LE: loop exit
PB: predicated region body
PF: predicated region fallthrough
CT: control target
= control target key end

     0   :  { %9 = vsyncpa [#allocation7], 0  ;;  %s2243_s0 = inlined_call_operand.hbm [shape: f32[2,8,32], index: 0, kind: input, shape index: {}]   ;;  %s2244_s1 = inlined_call_operand.hbm [shape: f32[32,96], index: 1, kind: input, shape index: {}]   ;;  %s2245_s2 = inlined_call_operand.hbm [shape: f32[32,32], index: 2, kind: input, shape index: {}]   ;;  %s2246_s3 = inlined_call_operand.vmem [shape: f32[1,32], index: 3, kind: input, shape index: {}]   ;;  %s2247_s4 = inlined_call_operand.hbm [shape: f32[2,8,32], index: 4, kind: output, shape index: {}]  }
   0x1   :  { %10 = vsyncpa [#allocation10], 0 }
   0x2   :  { %11 = vsyncpa [#allocation8], 0  ;;  %s2020_s15 = smov [#allocation9]   ;;  %s2021_s17 = smov [#allocation6]  }
   0x3   :  { %s29_s16 = sshll.u32 %s2020_s15, 4  ;;  %s17_s18 = sshll.u32 %s2021_s17, 4  ;;  %s30_s16 = int_to_ptr.vmem [resolvable:$true] %s29_s16  ;;  %s18_s18 = int_to_ptr.vmem [resolvable:$true] %s17_s18 }
   0x4   :  { %s1942_s19 = scalar_lea.vmem %s30_s16, 512  ;;  %p1947_p1 = scmp.lt.s32.totalorder %s30_s16, %s30_s16 }
   0x5   :  { %p1943_p0 = scmp.ne.s32.totalorder %s30_s16, %s1942_s19  ;;  %p1948_p2 = scmp.lt.s32.totalorder %s1942_s19, %s1942_s19 }
   0x7   :  { %p1949_p3 = por %p1948_p2, %p1947_p1 }
   0x9   :  { %p1950_p4 = pnand %p1949_p3, %p1943_p0 }
   0xb   :  { %1953 = shalt.err (!%p1950_p4)
}
   0xc   :  { %s2022_s20 = smov 128   ;;  %s2023_s21 = smov 8  }
   0xd   :  { %35 = dma.hbm_to_vmem [thread:$0]  %s2244_s1, 512, %s30_s16, [#allocation10], %s2022_s20, %s2022_s20, %s2023_s21  }
   0xe   :  { %s1962_s24 = scalar_lea.vmem %s18_s18, 256  ;;  %p1967_p6 = scmp.lt.s32.totalorder %s18_s18, %s18_s18 }
   0xf   :  { %p1963_p5 = scmp.ne.s32.totalorder %s18_s18, %s1962_s24  ;;  %p1968_p7 = scmp.lt.s32.totalorder %s1962_s24, %s1962_s24 }
  0x11   :  { %p1969_p8 = por %p1968_p7, %p1967_p6 }
  0x13   :  { %p1970_p9 = pnand %p1969_p8, %p1963_p5 }
  0x15   :  { %1973 = shalt.err (!%p1970_p9)
}
  0x16   :  { %23 = dma.hbm_to_vmem [thread:$0]  %s2243_s0, 256, %s18_s18, [#allocation7], %s2022_s20, %s2022_s20, %s2023_s21  }
  0x17   :  { %s2024_s27 = smov [#allocation11]  }
  0x18   :  { %s41_s28 = sshll.u32 %s2024_s27, 4  ;;  %s42_s28 = int_to_ptr.vmem [resolvable:$true] %s41_s28 }
  0x19   :  { %s1982_s29 = scalar_lea.vmem %s42_s28, 512  ;;  %p1987_p11 = scmp.lt.s32.totalorder %s42_s28, %s42_s28 }
  0x1a   :  { %p1983_p10 = scmp.ne.s32.totalorder %s42_s28, %s1982_s29  ;;  %p1988_p12 = scmp.lt.s32.totalorder %s1982_s29, %s1982_s29 }
  0x1c   :  { %p1989_p13 = por %p1988_p12, %p1987_p11 }
  0x1e   :  { %p1990_p0 = pnand %p1989_p13, %p1983_p10 }
  0x20   :  { %1993 = shalt.err (!%p1990_p0)
}
  0x21   :  { %47 = dma.hbm_to_vmem [thread:$0]  %s2245_s2, 512, %s42_s28, [#allocation10], %s2022_s20, %s2022_s20, %s2023_s21  }
  0x22   :  { %2014 = dma.done.wait [#allocation7], 256  }
  0x23   :  { %2015 = vsyncadd [#allocation7], 4294967040 }
  0x24   :  { %2016 = dma.done.wait [#allocation10], 1024  }
  0x25   :  { %2017 = vsyncadd [#allocation10], 4294966272  ;;  %vm65_vm0 = vcmask 261120   ;;  %v64_v0 = vld [vmem:[#allocation9 + $0x18] sm:$0xff]  ;;  %v63_v1 = vld [vmem:[#allocation9 + $0x10] sm:$0xff]  ;;  %v2025_v6 = vmov 0.0  }
  0x26   :  { %1779 = vmatprep.subr.mxu0 %v64_v0  ;;  %v59_v2 = vld [vmem:[#allocation6] sm:$0xff]  ;;  %v62_v3 = vld [vmem:[#allocation9 + $0x8] sm:$0xff]  ;;  %v61_v4 = vld [vmem:[#allocation9] sm:$0xff]  ;;  %1790 = vmatprep.subr.mxu1 %v2025_v6  ;;  %vm149_vm1 = vcmask 64512   ;;  %vm2026_vm2 = vmmov 0   ;;  %s2027_s0 = smov 80  }
  0x27   :  { %1780 = vmatpush3.msra.mxu0 %v64_v0  ;;  %1787 = vmatprep.mubr.msk.f32.mxu0 %vm65_vm0, %v59_v2  ;;  %v60_v5 = vld [vmem:[#allocation6 + $0x8] sm:$0xff]  ;;  %s2028_s2 = smov 96   ;;  %s2029_s5 = smov 88   ;;  %vm1567_vm3 = vcmask 130112   ;;  %vm1578_vm4 = vcmask 195712   ;;  %vm1589_vm5 = vcmask 261312  }
  0x28   :  { %1781 = vmatprep.subr.mxu0 %v63_v1  ;;  %1792 = vmatprep.mubr.msk.f32.mxu1 %vm2026_vm2, %v2025_v6  ;;  %s2030_s6 = smov 120   ;;  %s2031_s7 = smov 112  }
  0x29   :  { %1782 = vmatpush3.msra.mxu0 %v63_v1  ;;  %s2032_s8 = smov 72   ;;  %s2033_s9 = smov 104  }
  0x2a   :  { %1783 = vmatprep.subr.mxu0 %v62_v3  ;;  %s2034_s10 = smov 64   ;;  %s2035_s11 = smov 56  }
  0x2b   :  { %1784 = vmatpush3.msra.mxu0 %v62_v3  ;;  %s2036_s12 = smov 48   ;;  %s2037_s13 = smov 40  }
  0x2c   :  { %1785 = vmatprep.subr.mxu0 %v61_v4  ;;  %s2038_s14 = smov 16   ;;  %s2039_s15 = smov 24  }
  0x2d   :  { %1786 = vmatpush3.msra.mxu0 %v61_v4  ;;  %s2040_s18 = smov [#allocation12]  }
  0x2e   :  { %1788 = vmatmul.mubr.msk.f32.vlgmr.msra.gmra.mxu0 %vm65_vm0, %v60_v5  ;;  %1810 = vmatprep.subr.mxu0 %v2025_v6  ;;  %s1693_s19 = sshll.u32 %s2040_s18, 4  ;;  %s1694_s19 = int_to_ptr.vmem [resolvable:$true] %s1693_s19 }
  0x2f   :  { %1812 = vmatprep.mubr.msk.f32.mxu0 %vm2026_vm2, %v2025_v6  ;;  %s1994_s22 = scalar_lea.vmem %s1694_s19, 256  ;;  %p1999_p2 = scmp.lt.s32.totalorder %s1694_s19, %s1694_s19 }
  0x30   :  { %p1995_p1 = scmp.ne.s32.totalorder %s1694_s19, %s1994_s22  ;;  %p2000_p3 = scmp.lt.s32.totalorder %s1994_s22, %s1994_s22 }
  0x32   :  { %p2001_p4 = por %p2000_p3, %p1999_p2 }
  0x34   :  { %p2002_p5 = pnand %p2001_p4, %p1995_p1 }
  0xee   :  { %v2088_v7 = vpop.f32.mrf.mxu0 }
  0xef   :  { %210 = vrot.lane.b32.xlu1 %v2088_v7, %s2027_s0  ;;  %v148_v8 = vmul.f32 0.35355338, %v2088_v7 }
  0xf0   :  { %v2096_v9 = vpop.f32.mrf.mxu0 }
  0xf1   :  { %154 = vrot.lane.b32.xlu0 %v2096_v9, %s2028_s2  ;;  %151 = vst.msk [vmem:[#allocation2 + $0x8] sm:$0xff] %vm149_vm1, %v148_v8  ;;  %v147_v10 = vmul.f32 0.35355338, %v2096_v9 }
  0xf3   :  { %181 = vrot.lane.b32.xlu1 %v2096_v9, %s2029_s5  ;;  %150 = vst.msk [vmem:[#allocation2] sm:$0xff] %vm149_vm1, %v147_v10 }
  0xf5   :  { %156 = vrot.lane.b32.xlu0 %v2088_v7, %s2028_s2 }
  0xf7   :  { %174 = vrot.lane.b32.xlu1 %v148_v8, %s2030_s6 }
  0xf8   :  { %v254_v23 = vld [vmem:[#allocation2 + $0x8] sm:$0xff] }
  0xf9   :  { %183 = vrot.lane.b32.xlu0 %v2088_v7, %s2029_s5 }
  0xfa   :  { %v253_v19 = vld [vmem:[#allocation2] sm:$0xff] }
  0xfb   :  { %172 = vrot.lane.b32.xlu1 %v147_v10, %s2030_s6 }
  0xfd   :  { %208 = vrot.lane.b32.xlu0 %v2096_v9, %s2027_s0 }
  0xff   :  { %201 = vrot.lane.b32.xlu1 %v148_v8, %s2031_s7 }
 0x101   :  { %235 = vrot.lane.b32.xlu0 %v2096_v9, %s2032_s8 }
 0x103   :  { %237 = vrot.lane.b32.xlu1 %v2088_v7, %s2032_s8 }
 0x105   :  { %199 = vrot.lane.b32.xlu0 %v147_v10, %s2031_s7 }
 0x107   :  { %228 = vrot.lane.b32.xlu1 %v148_v8, %s2033_s9 }
 0x109   :  { %226 = vrot.lane.b32.xlu0 %v147_v10, %s2033_s9 }
 0x10b   :  { %162 = vrot.lane.b32.xlu1 %v2096_v9, %s2034_s10 }
 0x10d   :  { %164 = vrot.lane.b32.xlu0 %v2088_v7, %s2034_s10 }
 0x10f   :  { %190 = vrot.lane.b32.xlu1 %v2096_v9, %s2035_s11 }
 0x111   :  { %217 = vrot.lane.b32.xlu0 %v2096_v9, %s2036_s12 }
 0x113   :  { %192 = vrot.lane.b32.xlu1 %v2088_v7, %s2035_s11 }
 0x117   :  { %219 = vrot.lane.b32.xlu1 %v2088_v7, %s2036_s12 }
 0x161   :  { %v211_v11 = vpop.permute.xlu1 %210 }
 0x162   :  { %216 = vst.msk [vmem:[#allocation3 + $0x28] sm:$0xff] %vm149_vm1, %v211_v11 }
 0x163   :  { %v155_v12 = vpop.permute.xlu0 %154 }
 0x164   :  { %160 = vst.msk [vmem:[#allocation3] sm:$0xff] %vm149_vm1, %v155_v12 }
 0x165   :  { %v182_v13 = vpop.permute.xlu1 %181 }
 0x166   :  { %188 = vst.msk [vmem:[#allocation3 + $0x10] sm:$0xff] %vm149_vm1, %v182_v13 }
 0x167   :  { %v157_v14 = vpop.permute.xlu0 %156 }
 0x168   :  { %161 = vst.msk [vmem:[#allocation3 + $0x8] sm:$0xff] %vm149_vm1, %v157_v14 }
 0x169   :  { %v175_v15 = vpop.permute.xlu1 %174  ;;  %v266_v34 = vld [vmem:[#allocation3 + $0x28] sm:$0xff] }
 0x16a   :  { %180 = vst.msk [vmem:[#allocation2 + $0x18] sm:$0xff] %vm149_vm1, %v175_v15 }
 0x16b   :  { %v184_v16 = vpop.permute.xlu0 %183  ;;  %v261_v17 = vld [vmem:[#allocation3] sm:$0xff] }
 0x16c   :  { %189 = vst.msk [vmem:[#allocation3 + $0x18] sm:$0xff] %vm149_vm1, %v184_v16  ;;  %1791 = vmatpush3.xpose.msk.msra.mxu1 %vm149_vm1, %v261_v17 }
 0x16d   :  { %v173_v18 = vpop.permute.xlu1 %172  ;;  %1795 = vmatprep.subr.mxu1 %v2025_v6  ;;  %v263_v25 = vld [vmem:[#allocation3 + $0x10] sm:$0xff] }
 0x16e   :  { %179 = vst.msk [vmem:[#allocation2 + $0x10] sm:$0xff] %vm149_vm1, %v173_v18 }
 0x16f   :  { %v209_v20 = vpop.permute.xlu0 %208  ;;  %1793 = vmatmul.mubr.msk.f32.vlgmr.msra.gmra.mxu1 %vm149_vm1, %v253_v19  ;;  %v262_v21 = vld [vmem:[#allocation3 + $0x8] sm:$0xff] }
 0x170   :  { %215 = vst.msk [vmem:[#allocation3 + $0x20] sm:$0xff] %vm149_vm1, %v209_v20  ;;  %1796 = vmatpush3.xpose.msk.msra.mxu1 %vm149_vm1, %v262_v21  ;;  %1797 = vmatprep.mubr.msk.f32.mxu1 %vm2026_vm2, %v2025_v6 }
 0x171   :  { %v202_v22 = vpop.permute.xlu1 %201  ;;  %1800 = vmatprep.subr.mxu1 %v2025_v6  ;;  %v256_v32 = vld [vmem:[#allocation2 + $0x18] sm:$0xff] }
 0x172   :  { %207 = vst.msk [vmem:[#allocation2 + $0x28] sm:$0xff] %vm149_vm1, %v202_v22 }
 0x173   :  { %v236_v24 = vpop.permute.xlu0 %235  ;;  %1798 = vmatmul.mubr.msk.f32.vlgmr.msra.gmra.mxu1 %vm149_vm1, %v254_v23  ;;  %v264_v29 = vld [vmem:[#allocation3 + $0x18] sm:$0xff] }
 0x174   :  { %242 = vst.msk [vmem:[#allocation3 + $0x30] sm:$0xff] %vm149_vm1, %v236_v24  ;;  %1801 = vmatpush3.xpose.msk.msra.mxu1 %vm149_vm1, %v263_v25  ;;  %1802 = vmatprep.mubr.msk.f32.mxu1 %vm2026_vm2, %v2025_v6 }
 0x175   :  { %v238_v26 = vpop.permute.xlu1 %237  ;;  %v255_v27 = vld [vmem:[#allocation2 + $0x10] sm:$0xff]  ;;  %1805 = vmatprep.subr.mxu1 %v2025_v6 }
 0x176   :  { %243 = vst.msk [vmem:[#allocation3 + $0x38] sm:$0xff] %vm149_vm1, %v238_v26 }
 0x177   :  { %v200_v28 = vpop.permute.xlu0 %199  ;;  %1803 = vmatmul.mubr.msk.f32.vlgmr.msra.gmra.mxu1 %vm149_vm1, %v255_v27  ;;  %v265_v30 = vld [vmem:[#allocation3 + $0x20] sm:$0xff] }
 0x178   :  { %206 = vst.msk [vmem:[#allocation2 + $0x20] sm:$0xff] %vm149_vm1, %v200_v28  ;;  %1806 = vmatpush3.xpose.msk.msra.mxu1 %vm149_vm1, %v264_v29  ;;  %1811 = vmatpush3.xpose.msk.msra.mxu0 %vm149_vm1, %v265_v30 }
 0x179   :  { %v229_v31 = vpop.permute.xlu1 %228  ;;  %1807 = vmatprep.mubr.msk.f32.mxu1 %vm2026_vm2, %v2025_v6  ;;  %1815 = vmatprep.subr.mxu1 %v2025_v6  ;;  %v258_v36 = vld [vmem:[#allocation2 + $0x28] sm:$0xff] }
 0x17a   :  { %234 = vst.msk [vmem:[#allocation2 + $0x38] sm:$0xff] %vm149_vm1, %v229_v31  ;;  %1820 = vmatprep.subr.mxu0 %v2025_v6 }
 0x17b   :  { %v227_v33 = vpop.permute.xlu0 %226  ;;  %1808 = vmatmul.mubr.msk.f32.vlgmr.msra.gmra.mxu1 %vm149_vm1, %v256_v32  ;;  %v267_v40 = vld [vmem:[#allocation3 + $0x30] sm:$0xff] }
 0x17c   :  { %233 = vst.msk [vmem:[#allocation2 + $0x30] sm:$0xff] %vm149_vm1, %v227_v33  ;;  %1816 = vmatpush3.xpose.msk.msra.mxu1 %vm149_vm1, %v266_v34  ;;  %1817 = vmatprep.mubr.msk.f32.mxu1 %vm2026_vm2, %v2025_v6 }
 0x17d   :  { %v163_v35 = vpop.permute.xlu1 %162  ;;  %1825 = vmatprep.subr.mxu1 %v2025_v6  ;;  %v268_v39 = vld [vmem:[#allocation3 + $0x38] sm:$0xff] }
 0x17e   :  { %168 = vst.msk [vmem:[#allocation4] sm:$0xff] %vm149_vm1, %v163_v35 }
 0x17f   :  { %v165_v37 = vpop.permute.xlu0 %164  ;;  %1818 = vmatmul.mubr.msk.f32.vlgmr.msra.gmra.mxu1 %vm149_vm1, %v258_v36  ;;  %v257_v38 = vld [vmem:[#allocation2 + $0x20] sm:$0xff] }
 0x180   :  { %169 = vst.msk [vmem:[#allocation4 + $0x8] sm:$0xff] %vm149_vm1, %v165_v37  ;;  %1813 = vmatmul.mubr.msk.f32.vlgmr.msra.gmra.mxu0 %vm149_vm1, %v257_v38  ;;  %1826 = vmatpush3.xpose.msk.msra.mxu1 %vm149_vm1, %v268_v39 }
 0x181   :  { %1821 = vmatpush3.xpose.msk.msra.mxu0 %vm149_vm1, %v267_v40  ;;  %v191_v41 = vpop.permute.xlu1 %190  ;;  %1827 = vmatprep.mubr.msk.f32.mxu1 %vm2026_vm2, %v2025_v6  ;;  %v260_v42 = vld [vmem:[#allocation2 + $0x38] sm:$0xff] }
 0x182   :  { %197 = vst.msk [vmem:[#allocation4 + $0x10] sm:$0xff] %vm149_vm1, %v191_v41  ;;  %1822 = vmatprep.mubr.msk.f32.mxu0 %vm2026_vm2, %v2025_v6  ;;  %1830 = vmatprep.subr.mxu0 %v2025_v6 }
 0x183   :  { %v218_v43 = vpop.permute.xlu0 %217  ;;  %1828 = vmatmul.mubr.msk.f32.vlgmr.msra.gmra.mxu1 %vm149_vm1, %v260_v42  ;;  %v259_v44 = vld [vmem:[#allocation2 + $0x30] sm:$0xff]  ;;  %1835 = vmatprep.subr.mxu1 %v2025_v6 }
 0x184   :  { %224 = vst.msk [vmem:[#allocation4 + $0x20] sm:$0xff] %vm149_vm1, %v218_v43  ;;  %1823 = vmatmul.mubr.msk.f32.vlgmr.msra.gmra.mxu0 %vm149_vm1, %v259_v44  ;;  %1837 = vmatprep.mubr.msk.f32.mxu1 %vm2026_vm2, %v2025_v6 }
 0x185   :  { %v193_v45 = vpop.permute.xlu1 %192  ;;  %v269_v46 = vld [vmem:[#allocation4] sm:$0xff]  ;;  %1832 = vmatprep.mubr.msk.f32.mxu0 %vm2026_vm2, %v2025_v6 }
 0x186   :  { %198 = vst.msk [vmem:[#allocation4 + $0x18] sm:$0xff] %vm149_vm1, %v193_v45  ;;  %1831 = vmatpush3.msra.mxu0 %v269_v46 }
 0x187   :  { %v270_v47 = vld [vmem:[#allocation4 + $0x8] sm:$0xff]  ;;  %1840 = vmatprep.subr.mxu0 %v2025_v6 }
 0x188   :  { %1836 = vmatpush3.msra.mxu1 %v270_v47 }
 0x189   :  { %v220_v48 = vpop.permute.xlu1 %219  ;;  %1845 = vmatprep.subr.mxu1 %v2025_v6 }
 0x18a   :  { %225 = vst.msk [vmem:[#allocation4 + $0x28] sm:$0xff] %vm149_vm1, %v220_v48 }
 0x18b   :  { %v273_v36 = vld [vmem:[#allocation4 + $0x20] sm:$0xff] }
 0x18d   :  { %v272_v46 = vld [vmem:[#allocation4 + $0x18] sm:$0xff] }
 0x22f   :  { %v349_v49 = vpop.f32.mrf.mxu1 }
 0x230   :  { %v885_v50 = vsel %vm149_vm1, %v349_v49, -inf }
 0x231   :  { %886 = vmax.xlane.f32.xlu0 %v885_v50  ;;  %v1794_v51 = vpop.f32.mrf.mxu1  ;;  %v274_v50 = vld [vmem:[#allocation4 + $0x28] sm:$0xff] }
 0x233   :  { %v425_v52 = vpop.f32.mrf.mxu1 }
 0x234   :  { %v888_v8 = vsel %vm149_vm1, %v425_v52, -inf }
 0x235   :  { %v1799_v53 = vpop.f32.mrf.mxu1 }
 0x237   :  { %v501_v54 = vpop.f32.mrf.mxu1 }
 0x238   :  { %v891_v55 = vsel %vm149_vm1, %v501_v54, -inf }
 0x239   :  { %892 = vmax.xlane.f32.xlu0 %v891_v55  ;;  %v1804_v56 = vpop.f32.mrf.mxu1 }
 0x23b   :  { %v577_v57 = vpop.f32.mrf.mxu1 }
 0x23c   :  { %v894_v58 = vsel %vm149_vm1, %v577_v57, -inf }
 0x23d   :  { %895 = vmax.xlane.f32.xlu0 %v894_v58  ;;  %v1809_v59 = vpop.f32.mrf.mxu1 }
 0x23f   :  { %v729_v60 = vpop.f32.mrf.mxu1 }
 0x240   :  { %v653_v61 = vpop.f32.mrf.mxu0  ;;  %v900_v62 = vsel %vm149_vm1, %v729_v60, -inf }
 0x241   :  { %901 = vmax.xlane.f32.xlu0 %v900_v62  ;;  %v1819_v63 = vpop.f32.mrf.mxu1  ;;  %v897_v0 = vsel %vm149_vm1, %v653_v61, -inf }
 0x242   :  { %v1814_v1 = vpop.f32.mrf.mxu0  ;;  %898 = vmax.xlane.f32.xlu1 %v897_v0 }
 0x243   :  { %v881_v2 = vpop.f32.mrf.mxu1 }
 0x244   :  { %v805_v3 = vpop.f32.mrf.mxu0  ;;  %v906_v4 = vsel %vm149_vm1, %v881_v2, -inf }
 0x245   :  { %907 = vmax.xlane.f32.xlu0 %v906_v4  ;;  %v1829_v5 = vpop.f32.mrf.mxu1  ;;  %v903_v11 = vsel %vm149_vm1, %v805_v3, -inf }
 0x246   :  { %v1824_v10 = vpop.f32.mrf.mxu0  ;;  %889 = vmax.xlane.f32.xlu1 %v888_v8 }
 0x24a   :  { %904 = vmax.xlane.f32.xlu1 %v903_v11 }
 0x25b   :  { %246 = vrot.lane.b32.xlu1 %v2088_v7, %s2037_s13  ;;  %244 = vrot.lane.b32.xlu0 %v2096_v9, %s2037_s13  ;;  %v271_v7 = vld [vmem:[#allocation4 + $0x10] sm:$0xff] }
 0x2ba   :  { %v887_v12 = vpop.xlane.xlu0 %886 }
 0x2bb   :  { %v909_v13 = vsub.f32 %v349_v49, %v887_v12 }
 0x2bd   :  { %v917_v14 = vmul.f32 1.442695, %v909_v13 }
 0x2bf   :  { %1902 = vpow2.f32 %v917_v14 }
 0x2c2   :  { %v893_v15 = vpop.xlane.xlu0 %892 }
 0x2c3   :  { %v911_v16 = vsub.f32 %v501_v54, %v893_v15 }
 0x2c5   :  { %v921_v17 = vmul.f32 1.442695, %v911_v16 }
 0x2c6   :  { %v896_v18 = vpop.xlane.xlu0 %895 }
 0x2c7   :  { %1904 = vpow2.f32 %v921_v17  ;;  %v912_v19 = vsub.f32 %v577_v57, %v896_v18 }
 0x2c9   :  { %v923_v20 = vmul.f32 1.442695, %v912_v19 }
 0x2ca   :  { %v902_v21 = vpop.xlane.xlu0 %901 }
 0x2cb   :  { %1906 = vpow2.f32 %v923_v20  ;;  %v899_v22 = vpop.xlane.xlu1 %898  ;;  %v914_v26 = vsub.f32 %v729_v60, %v902_v21  ;;  %v1597_v20 = vld [vmem:[#allocation11 + $0x18] sm:$0xff]  ;;  %v1596_v21 = vld [vmem:[#allocation11 + $0x10] sm:$0xff] }
 0x2cc   :  { %v2186_v23 = vpop.eup %1902  ;;  %v913_v24 = vsub.f32 %v653_v61, %v899_v22 }
 0x2cd   :  { %1833 = vmatmul.mubr.msk.f32.vlgmr.msra.gmra.mxu0 %vm149_vm1, %v2186_v23  ;;  %v927_v31 = vmul.f32 1.442695, %v914_v26  ;;  %v933_v55 = vsel %vm149_vm1, %v2186_v23, 0.0 }
 0x2ce   :  { %v925_v9 = vmul.f32 1.442695, %v913_v24  ;;  %1841 = vmatpush3.msra.mxu0 %v271_v7  ;;  %v908_v25 = vpop.xlane.xlu0 %907  ;;  %1842 = vmatprep.mubr.msk.f32.mxu0 %vm2026_vm2, %v2025_v6  ;;  %v1595_v7 = vld [vmem:[#allocation11 + $0x8] sm:$0xff] }
 0x2cf   :  { %v890_v27 = vpop.xlane.xlu1 %889  ;;  %1850 = vmatprep.subr.mxu0 %v2025_v6  ;;  %v916_v32 = vsub.f32 %v881_v2, %v908_v25 }
 0x2d0   :  { %1908 = vpow2.f32 %v925_v9  ;;  %v910_v28 = vsub.f32 %v425_v52, %v890_v27  ;;  %v1594_v27 = vld [vmem:[#allocation11] sm:$0xff] }
 0x2d1   :  { %v931_v38 = vmul.f32 1.442695, %v916_v32 }
 0x2d2   :  { %v919_v29 = vmul.f32 1.442695, %v910_v28  ;;  %v245_v30 = vpop.permute.xlu0 %244 }
 0x2d3   :  { %251 = vst.msk [vmem:[#allocation4 + $0x30] sm:$0xff] %vm149_vm1, %v245_v30  ;;  %v905_v33 = vpop.xlane.xlu1 %904 }
 0x2d4   :  { %v1905_v34 = vpop.eup %1904  ;;  %1910 = vpow2.f32 %v919_v29  ;;  %v915_v35 = vsub.f32 %v805_v3, %v905_v33 }
 0x2d5   :  { %1843 = vmatmul.mubr.msk.f32.vlgmr.msra.gmra.mxu0 %vm149_vm1, %v1905_v34  ;;  %1912 = vpow2.f32 %v927_v31  ;;  %v939_v47 = vsel %vm149_vm1, %v1905_v34, 0.0 }
 0x2d6   :  { %v929_v37 = vmul.f32 1.442695, %v915_v35  ;;  %1851 = vmatpush3.msra.mxu0 %v273_v36  ;;  %1852 = vmatprep.mubr.msk.f32.mxu0 %vm2026_vm2, %v2025_v6 }
 0x2d7   :  { %v247_v39 = vpop.permute.xlu1 %246  ;;  %1860 = vmatprep.subr.mxu0 %v2025_v6 }
 0x2d8   :  { %v1907_v40 = vpop.eup %1906  ;;  %1914 = vpow2.f32 %v929_v37  ;;  %252 = vst.msk [vmem:[#allocation4 + $0x38] sm:$0xff] %vm149_vm1, %v247_v39 }
 0x2d9   :  { %v942_v41 = vsel %vm149_vm1, %v1907_v40, 0.0  ;;  %1916 = vpow2.f32 %v931_v38 }
 0x2da   :  { %943 = vadd.xlane.f32.xlu1 %v942_v41  ;;  %v275_v43 = vld [vmem:[#allocation4 + $0x30] sm:$0xff] }
 0x2dd   :  { %v1909_v42 = vpop.eup %1908 }
 0x2de   :  { %1853 = vmatmul.mubr.msk.f32.vlgmr.msra.gmra.mxu0 %vm149_vm1, %v1909_v42  ;;  %v945_v44 = vsel %vm149_vm1, %v1909_v42, 0.0 }
 0x2df   :  { %1861 = vmatpush3.msra.mxu0 %v275_v43  ;;  %946 = vadd.xlane.f32.xlu0 %v945_v44  ;;  %v276_v54 = vld [vmem:[#allocation4 + $0x38] sm:$0xff] }
 0x2e0   :  { %1862 = vmatprep.mubr.msk.f32.mxu0 %vm2026_vm2, %v2025_v6  ;;  %1870 = vmatprep.subr.mxu0 %v1597_v20 }
 0x2e1   :  { %v1911_v45 = vpop.eup %1910 }
 0x2e2   :  { %1838 = vmatmul.mubr.msk.f32.vlgmr.msra.gmra.mxu1 %vm149_vm1, %v1911_v45  ;;  %v1913_v48 = vpop.eup %1912  ;;  %v936_v57 = vsel %vm149_vm1, %v1911_v45, 0.0 }
 0x2e3   :  { %1846 = vmatpush3.msra.mxu1 %v272_v46  ;;  %940 = vadd.xlane.f32.xlu0 %v939_v47  ;;  %v948_v52 = vsel %vm149_vm1, %v1913_v48, 0.0  ;;  %v1732_v46 = vld [vmem:[%s2246_s3] ss:$0 sm:$0xff] }
 0x2e4   :  { %1847 = vmatprep.mubr.msk.f32.mxu1 %vm2026_vm2, %v2025_v6  ;;  %1855 = vmatprep.subr.mxu1 %v2025_v6 }
 0x2e5   :  { %v1915_v49 = vpop.eup %1914 }
 0x2e6   :  { %1848 = vmatmul.mubr.msk.f32.vlgmr.msra.gmra.mxu1 %vm149_vm1, %v1907_v40  ;;  %1863 = vmatmul.mubr.msk.f32.vlgmr.msra.gmra.mxu0 %vm149_vm1, %v1915_v49  ;;  %v951_v51 = vsel %vm149_vm1, %v1915_v49, 0.0  ;;  %v1917_v53 = vpop.eup %1916 }
 0x2e7   :  { %1856 = vmatpush3.msra.mxu1 %v274_v50  ;;  %952 = vadd.xlane.f32.xlu1 %v951_v51  ;;  %v954_v56 = vsel %vm149_vm1, %v1917_v53, 0.0 }
 0x2e8   :  { %949 = vadd.xlane.f32.xlu0 %v948_v52  ;;  %1857 = vmatprep.mubr.msk.f32.mxu1 %vm2026_vm2, %v2025_v6 }
 0x2e9   :  { %1865 = vmatprep.subr.mxu1 %v2025_v6  ;;  %1871 = vmatpush3.msra.mxu0 %v1597_v20 }
 0x2ea   :  { %1858 = vmatmul.mubr.msk.f32.vlgmr.msra.gmra.mxu1 %vm149_vm1, %v1913_v48  ;;  %1872 = vmatprep.subr.mxu0 %v1596_v21 }
 0x2eb   :  { %1866 = vmatpush3.msra.mxu1 %v276_v54  ;;  %934 = vadd.xlane.f32.xlu1 %v933_v55 }
 0x2ec   :  { %955 = vadd.xlane.f32.xlu0 %v954_v56  ;;  %1867 = vmatprep.mubr.msk.f32.mxu1 %vm2026_vm2, %v2025_v6 }
 0x2ed   :  { %1873 = vmatpush3.msra.mxu0 %v1596_v21 }
 0x2ee   :  { %1868 = vmatmul.mubr.msk.f32.vlgmr.msra.gmra.mxu1 %vm149_vm1, %v1917_v53  ;;  %1874 = vmatprep.subr.mxu0 %v1595_v7 }
 0x2ef   :  { %1875 = vmatpush3.msra.mxu0 %v1595_v7 }
 0x2f0   :  { %937 = vadd.xlane.f32.xlu0 %v936_v57  ;;  %1876 = vmatprep.subr.mxu0 %v1594_v27 }
 0x2f1   :  { %1877 = vmatpush3.msra.mxu0 %v1594_v27 }
 0x363   :  { %v944_v58 = vpop.xlane.xlu1 %943 }
 0x368   :  { %v947_v60 = vpop.xlane.xlu0 %946 }
 0x36c   :  { %v941_v62 = vpop.xlane.xlu0 %940 }
 0x370   :  { %v953_v59 = vpop.xlane.xlu1 %952 }
 0x371   :  { %v950_v63 = vpop.xlane.xlu0 %949 }
 0x374   :  { %v935_v61 = vpop.xlane.xlu1 %934 }
 0x375   :  { %1918 = vrcp.f32 %v935_v61  ;;  %v956_v0 = vpop.xlane.xlu0 %955 }
 0x376   :  { %1920 = vrcp.f32 %v941_v62 }
 0x377   :  { %1922 = vrcp.f32 %v947_v60 }
 0x379   :  { %v938_v6 = vpop.xlane.xlu0 %937 }
 0x37a   :  { %1924 = vrcp.f32 %v938_v6 }
 0x37b   :  { %1926 = vrcp.f32 %v944_v58 }
 0x37c   :  { %1928 = vrcp.f32 %v953_v59 }
 0x37d   :  { %1930 = vrcp.f32 %v950_v63 }
 0x37e   :  { %1932 = vrcp.f32 %v956_v0 }
 0x382   :  { %v1919_v1 = vpop.eup %1918 }
 0x383   :  { %v1921_v5 = vpop.eup %1920 }
 0x384   :  { %v1923_v12 = vpop.eup %1922 }
 0x387   :  { %v1925_v16 = vpop.eup %1924 }
 0x388   :  { %v1927_v22 = vpop.eup %1926 }
 0x389   :  { %v1929_v28 = vpop.eup %1928 }
 0x38a   :  { %v1931_v29 = vpop.eup %1930 }
 0x38b   :  { %v1933_v34 = vpop.eup %1932 }
 0x38d   :  { %v1026_v2 = vpop.f32.mrf.mxu0 }
 0x38e   :  { %v1549_v3 = vmul.f32 %v1919_v1, %v1026_v2 }
 0x38f   :  { %v1834_v4 = vpop.f32.mrf.mxu0 }
 0x390   :  { %1557 = vst.msk [vmem:[#allocation5] sm:$0xff] %vm149_vm1, %v1549_v3 }
 0x395   :  { %v1172_v8 = vpop.f32.mrf.mxu0 }
 0x396   :  { %v1551_v10 = vmul.f32 %v1921_v5, %v1172_v8 }
 0x397   :  { %v1844_v11 = vpop.f32.mrf.mxu0 }
 0x398   :  { %1561 = vrot.lane.b32.xlu1 %v1551_v10, %s2023_s21 }
 0x39e   :  { %v1318_v13 = vpop.f32.mrf.mxu0 }
 0x39f   :  { %v1553_v14 = vmul.f32 %v1923_v12, %v1318_v13 }
 0x3a0   :  { %v1854_v15 = vpop.f32.mrf.mxu0 }
 0x3a1   :  { %1572 = vrot.lane.b32.xlu1 %v1553_v14, %s2038_s14 }
 0x3a2   :  { %v1099_v17 = vpop.f32.mrf.mxu1 }
 0x3a3   :  { %v1550_v18 = vmul.f32 %v1925_v16, %v1099_v17 }
 0x3a4   :  { %v1839_v19 = vpop.f32.mrf.mxu1 }
 0x3a5   :  { %1558 = vst.msk [vmem:[#allocation5 + $0x8] sm:$0xff] %vm149_vm1, %v1550_v18 }
 0x3a6   :  { %v1245_v23 = vpop.f32.mrf.mxu1  ;;  %v1464_v24 = vpop.f32.mrf.mxu0 }
 0x3a7   :  { %v1552_v9 = vmul.f32 %v1927_v22, %v1245_v23  ;;  %v1555_v31 = vmul.f32 %v1929_v28, %v1464_v24 }
 0x3a8   :  { %v1849_v25 = vpop.f32.mrf.mxu1  ;;  %v1864_v26 = vpop.f32.mrf.mxu0 }
 0x3a9   :  { %1563 = vrot.lane.b32.xlu0 %v1552_v9, %s2023_s21 }
 0x3aa   :  { %v1391_v30 = vpop.f32.mrf.mxu1 }
 0x3ab   :  { %v1554_v32 = vmul.f32 %v1931_v29, %v1391_v30 }
 0x3ac   :  { %v1859_v33 = vpop.f32.mrf.mxu1 }
 0x3ad   :  { %1583 = vrot.lane.b32.xlu0 %v1555_v31, %s2039_s15  ;;  %1574 = vrot.lane.b32.xlu1 %v1554_v32, %s2038_s14 }
 0x3ae   :  { %v1537_v35 = vpop.f32.mrf.mxu1 }
 0x3af   :  { %v1556_v36 = vmul.f32 %v1933_v34, %v1537_v35 }
 0x3b0   :  { %v1869_v37 = vpop.f32.mrf.mxu1 }
 0x3b1   :  { %1585 = vrot.lane.b32.xlu1 %v1556_v36, %s2039_s15 }
 0x40a   :  { %v1562_v38 = vpop.permute.xlu1 %1561 }
 0x40b   :  { %1568 = vst.msk [vmem:[#allocation5] sm:$0xff] %vm1567_vm3, %v1562_v38 }
 0x413   :  { %v1573_v39 = vpop.permute.xlu1 %1572 }
 0x414   :  { %1579 = vst.msk [vmem:[#allocation5] sm:$0xff] %vm1578_vm4, %v1573_v39 }
 0x41b   :  { %v1564_v40 = vpop.permute.xlu0 %1563 }
 0x41c   :  { %1569 = vst.msk [vmem:[#allocation5 + $0x8] sm:$0xff] %vm1567_vm3, %v1564_v40 }
 0x41f   :  { %v1584_v41 = vpop.permute.xlu0 %1583  ;;  %v1575_v42 = vpop.permute.xlu1 %1574 }
 0x420   :  { %1590 = vst.msk [vmem:[#allocation5] sm:$0xff] %vm1589_vm5, %v1584_v41 }
 0x421   :  { %1580 = vst.msk [vmem:[#allocation5 + $0x8] sm:$0xff] %vm1578_vm4, %v1575_v42 }
 0x423   :  { %v1586_v43 = vpop.permute.xlu1 %1585 }
 0x424   :  { %1591 = vst.msk [vmem:[#allocation5 + $0x8] sm:$0xff] %vm1589_vm5, %v1586_v43 }
 0x427   :  { %v1592_v44 = vld [vmem:[#allocation5] sm:$0xff] }
 0x428   :  { %1878 = vmatprep.mubr.msk.f32.mxu0 %vm65_vm0, %v1592_v44 }
 0x42b   :  { %v1593_v45 = vld [vmem:[#allocation5 + $0x8] sm:$0xff] }
 0x42c   :  { %1879 = vmatmul.mubr.msk.f32.vlgmr.msra.gmra.mxu0 %vm65_vm0, %v1593_v45 }
 0x4ec   :  { %v1880_v47 = vpop.f32.mrf.mxu0 }
 0x4ed   :  { %v1683_v48 = vadd.f32 %v1880_v47, %v1732_v46 }
 0x4ee   :  { %v1677_v49 = vpop.f32.mrf.mxu0 }
 0x4ef   :  { %1687 = vst.msk [vmem:[#allocation12 + $0x8] sm:$0xff] %vm65_vm0, %v1683_v48  ;;  %v1678_v50 = vadd.f32 %v1732_v46, %v1677_v49 }
 0x4f1   :  { %1686 = vst.msk [vmem:[#allocation12] sm:$0xff] %vm65_vm0, %v1678_v50 }
 0x4f2   :  { %2005 = shalt.err (!%p2002_p5)
}
 0x4f3   :  { %1699 = dma.vmem_to_hbm [thread:$0]  %s1694_s19, 256, %s2247_s4, [#allocation8], %s2022_s20, %s2022_s20, %s2023_s21  }
 0x4f4   :  { %2018 = dma.done.wait [#allocation8], 256  }
 0x4f5   :  { %2019 = vsyncadd [#allocation8], 4294967040 }
 0x4f6   :  { %1703 = vsyncpa [#allocation7], 1 }
 0x4f7   :  { %1704 = vsyncpa [#allocation10], 1 }
 0x4f8   :  { %1705 = vsyncpa [#allocation8], 1 }

</bundles_post_ra>
